<compile_context>
chip_gen: v6e
topology: v6e:2x2x1
jax: 0.10.0
libtpu: 0.0.40
codegen_flags: <defaults>
</compile_context>

<pallas_src>
import jax
import jax.numpy as jnp
from jax.experimental import pallas as pl
from jax.experimental.pallas import tpu as pltpu


def _round_up(v: int, m: int) -> int:
    return ((v + m - 1) // m) * m


# ----------------------------------------------------------------------------
# Pallas kernel: fused (weight + bias) generator MLP, fully lane-dense
# ----------------------------------------------------------------------------
def _fused_generator_kernel(mem_ref, w1_ref, b1_ref, w2_ref, b2_ref,
                            w3_ref, b3_ref, out_ref):
    """Fused generator MLP (both PyTorch branches packed into one 3-layer MLP).

    mem_ref : (TB, M)
    w1 (M, 128)    b1 (1, 128)     -- column-concat of both branches' layer-1, padded
    w2 (128, 128)  b2 (1, 128)     -- block-diagonal, hidden 5+5 padded to 128
    w3 (128, NPAD) b3 (1, NPAD)    -- block-diagonal, NPAD = round_up(IN*OUT+OUT, 128)
    out_ref : (TB, NPAD) combined [flat_weights | biases | zero-pad] slab
    """
    m = mem_ref[...]  # native dtype straight into the MXU (f32 accumulation)

    h = jnp.dot(m, w1_ref[...], preferred_element_type=jnp.float32) + b1_ref[...]
    h = jnp.maximum(h, 0.0)
    h = jnp.dot(h, w2_ref[...], preferred_element_type=jnp.float32) + b2_ref[...]
    h = jnp.maximum(h, 0.0)
    out = jnp.dot(h, w3_ref[...], preferred_element_type=jnp.float32) + b3_ref[...]

    out_ref[...] = out.astype(out_ref.dtype)


# ----------------------------------------------------------------------------
# Module-equivalent wrapper
# ----------------------------------------------------------------------------
class ParameterGenerator:
    _H1 = 32       # first hidden width (per branch)
    _H2 = 5        # second hidden width (per branch)
    _H1F = 128     # fused + padded layer-1 width (2*32 -> 128 lanes)
    _H2F = 128     # fused + padded layer-2 width (2*5  -> 128 lanes)
    _H2_OFF = 8    # column offset of the bias-branch block inside layer 2
    _SMALL_B = 256  # below this, skip pallas_call (launch overhead dominates)
    _TB_MAX = 4096  # max batch tile (double-buffered tiles ~5 MiB at M=16)

    def __init__(self, memory_size, input_dim, output_dim, num_nodes, dynamic,
                 key=jax.random.PRNGKey(42), dtype=jnp.float32):
        self.memory_size = memory_size
        self.input_dim = input_dim
        self.output_dim = output_dim
        self.num_nodes = num_nodes
        self.dynamic = dynamic
        self.dtype = dtype

        def linear_params(k, fan_in, fan_out):
            # PyTorch-style uniform(-1/sqrt(fan_in), 1/sqrt(fan_in)) init.
            kw, kb = jax.random.split(k)
            bound = 1.0 / jnp.sqrt(jnp.float32(fan_in))
            w = jax.random.uniform(kw, (fan_in, fan_out), dtype, -bound, bound)
            b = jax.random.uniform(kb, (1, fan_out), dtype, -bound, bound)
            return w, b

        if self.dynamic:
            ks = jax.random.split(key, 6)
            H1, H2 = self._H1, self._H2
            H1F, H2F, OFF = self._H1F, self._H2F, self._H2_OFF
            M = memory_size
            NW = input_dim * output_dim
            NB = output_dim
            self._NW, self._NB = NW, NB
            self._N = NW + NB
            self._NPAD = max(128, _round_up(self._N, 128))

            # Raw (unfused) parameters — kept for the pure-JAX reference.
            self.w1w, self.b1w = linear_params(ks[0], M, H1)
            self.w2w, self.b2w = linear_params(ks[1], H1, H2)
            self.w3w, self.b3w = linear_params(ks[2], H2, NW)
            self.w1b, self.b1b = linear_params(ks[3], M, H1)
            self.w2b, self.b2b = linear_params(ks[4], H1, H2)
            self.w3b, self.b3b = linear_params(ks[5], H2, NB)

            # --- one-time host-side packing (branch fusion + 128-lane pad) ---
            # Layer 1: column concat into a 128-wide lane-dense block.
            fw1 = jnp.zeros((M, H1F), dtype)
            fw1 = fw1.at[:, 0:H1].set(self.w1w).at[:, H1:2 * H1].set(self.w1b)
            fb1 = jnp.zeros((1, H1F), dtype)
            fb1 = fb1.at[:, 0:H1].set(self.b1w).at[:, H1:2 * H1].set(self.b1b)
            self.fw1, self.fb1 = fw1, fb1
            # Layer 2: block-diagonal (rows 0:32 -> weight branch, 32:64 -> bias
            # branch); padded columns have zero weight AND zero bias, so their
            # ReLU activations are exactly 0.
            fw2 = jnp.zeros((H1F, H2F), dtype)
            fw2 = fw2.at[0:H1, 0:H2].set(self.w2w)
            fw2 = fw2.at[H1:2 * H1, OFF:OFF + H2].set(self.w2b)
            fb2 = jnp.zeros((1, H2F), dtype)
            fb2 = fb2.at[:, 0:H2].set(self.b2w).at[:, OFF:OFF + H2].set(self.b2b)
            self.fw2, self.fb2 = fw2, fb2
            # Layer 3: block-diagonal into the padded output slab; padded rows
            # (matching zero layer-2 activations) and padded columns are zero.
            fw3 = jnp.zeros((H2F, self._NPAD), dtype)
            fw3 = fw3.at[0:H2, 0:NW].set(self.w3w)
            fw3 = fw3.at[OFF:OFF + H2, NW:self._N].set(self.w3b)
            fb3 = jnp.zeros((1, self._NPAD), dtype)
            fb3 = fb3.at[:, 0:NW].set(self.b3w).at[:, NW:self._N].set(self.b3b)
            self.fw3, self.fb3 = fw3, fb3
            # Note: for bf16 inputs on v6e/v7x, construct with dtype=jnp.bfloat16
            # so the dots run as native bf16 MXU ops (f32 accumulation is kept
            # via preferred_element_type).
        else:
            kw, kb = jax.random.split(key)
            # torch.rand -> uniform [0, 1)
            self.weights = jax.random.uniform(kw, (input_dim, output_dim), dtype)
            self.biases = jax.random.uniform(kb, (1, output_dim), dtype)

    # ------------------------------------------------------------------
    def _fused_mlp_xla(self, memory):
        """Small-batch bypass: identical fused math, plain XLA dots."""
        h = jnp.maximum(
            jnp.dot(memory, self.fw1, preferred_element_type=jnp.float32)
            + self.fb1, 0.0)
        h = jnp.maximum(
            jnp.dot(h, self.fw2, preferred_element_type=jnp.float32)
            + self.fb2, 0.0)
        out = (jnp.dot(h, self.fw3, preferred_element_type=jnp.float32)
               + self.fb3)
        return out.astype(self.dtype)

    def __call__(self, x, memory=None):
        B = x.shape[0]

        if not self.dynamic:
            # Static path: broadcast views are free (fused by XLA into the
            # consumer); a Pallas kernel here would only waste HBM bandwidth.
            weights = jnp.broadcast_to(self.weights[None, :, :],
                                       (B, self.input_dim, self.output_dim))
            biases = jnp.broadcast_to(self.biases, (B, self.output_dim))
            return weights, biases

        assert memory is not None and memory.shape == (B, self.memory_size)
        M, N, NW, NPAD = self.memory_size, self._N, self._NW, self._NPAD

        if B <= self._SMALL_B:
            # Launch/DMA fixed cost dominates at tiny batches: use plain XLA.
            fused = self._fused_mlp_xla(memory)
        else:
            # >= 2 parallel grid steps so both v7x TensorCores get work; tile
            # capped at _TB_MAX so double-buffered tiles stay small on all
            # chips (v5e 16 MiB scoped default included).  Ragged last tiles
            # (B % TB != 0) are fine: stores are masked, rows are independent.
            TB = min(self._TB_MAX, _round_up(pl.cdiv(B, 2), 8))
            grid = (pl.cdiv(B, TB),)

            def _param_spec(p):
                return pl.BlockSpec(p.shape, lambda i: (0, 0))

            fused = pl.pallas_call(
                _fused_generator_kernel,
                out_shape=jax.ShapeDtypeStruct((B, NPAD), self.dtype),
                grid_spec=pltpu.PrefetchScalarGridSpec(
                    num_scalar_prefetch=0,
                    grid=grid,
                    in_specs=[
                        pl.BlockSpec((TB, M), lambda i: (i, 0)),
                        _param_spec(self.fw1), _param_spec(self.fb1),
                        _param_spec(self.fw2), _param_spec(self.fb2),
                        _param_spec(self.fw3), _param_spec(self.fb3),
                    ],
                    out_specs=pl.BlockSpec((TB, NPAD), lambda i: (i, 0)),
                ),
                compiler_params=pltpu.CompilerParams(
                    dimension_semantics=("parallel",),
                    vmem_limit_bytes=32 * 1024 * 1024),
            )(memory, self.fw1, self.fb1, self.fw2, self.fb2,
              self.fw3, self.fb3)

        weights = fused[:, :NW].reshape(B, self.input_dim, self.output_dim)
        biases = fused[:, NW:N]
        return weights, biases


# ----------------------------------------------------------------------------
# Pure-JAX reference (unfused parameters) for correctness check
# ----------------------------------------------------------------------------
def _reference(pg: ParameterGenerator, x, memory):
    B = x.shape[0]
    if pg.dynamic:
        def mlp(m, w1, b1, w2, b2, w3, b3):
            h = jnp.maximum(m @ w1 + b1, 0.0)
            h = jnp.maximum(h @ w2 + b2, 0.0)
            return h @ w3 + b3
        w = mlp(memory, pg.w1w, pg.b1w, pg.w2w, pg.b2w, pg.w3w, pg.b3w)
        b = mlp(memory, pg.w1b, pg.b1b, pg.w2b, pg.b2b, pg.w3b, pg.b3b)
        return w.reshape(B, pg.input_dim, pg.output_dim), b
    else:
        return (jnp.broadcast_to(pg.weights[None], (B, pg.input_dim, pg.output_dim)),
                jnp.broadcast_to(pg.biases, (B, pg.output_dim)))


if __name__ == "__main__":
    key = jax.random.PRNGKey(0)
    kx, kmem, kx2, kmem2 = jax.random.split(key, 4)

    memory_size, input_dim, output_dim, num_nodes = 16, 4, 8, 16
    pg_dyn = ParameterGenerator(memory_size, input_dim, output_dim, num_nodes,
                                dynamic=True)

    # --- dynamic, small batch: XLA-bypass path -------------------------------
    B = 2
    x = jax.random.normal(kx, (B, 4, 16, 16), jnp.float32)
    memory = jax.random.normal(kmem, (B, memory_size), jnp.float32)
    w_small, b_small = pg_dyn(x, memory)
    jax.block_until_ready((w_small, b_small))
    w_ref, b_ref = _reference(pg_dyn, x, memory)
    assert w_small.shape == (B, input_dim, output_dim)
    assert b_small.shape == (B, output_dim)
    assert jnp.allclose(w_small, w_ref, atol=1e-5, rtol=1e-5)
    assert jnp.allclose(b_small, b_ref, atol=1e-5, rtol=1e-5)

    # --- dynamic, large batch: Pallas kernel path (2 parallel grid steps) ----
    B2 = 1024
    x2 = jax.random.normal(kx2, (B2, 4, 16, 16), jnp.float32)
    memory2 = jax.random.normal(kmem2, (B2, memory_size), jnp.float32)
    w_big, b_big = pg_dyn(x2, memory2)
    jax.block_until_ready((w_big, b_big))
    w_ref2, b_ref2 = _reference(pg_dyn, x2, memory2)
    assert w_big.shape == (B2, input_dim, output_dim)
    assert b_big.shape == (B2, output_dim)
    assert jnp.allclose(w_big, w_ref2, atol=1e-5, rtol=1e-5)
    assert jnp.allclose(b_big, b_ref2, atol=1e-5, rtol=1e-5)

    # --- static (non-dynamic) path: broadcast views, no kernel needed --------
    pg_fc = ParameterGenerator(memory_size, input_dim, output_dim, num_nodes,
                               dynamic=False)
    w_fc, b_fc = pg_fc(x)
    jax.block_until_ready((w_fc, b_fc))
    w_ref3, b_ref3 = _reference(pg_fc, x, None)
    assert jnp.allclose(w_fc, w_ref3) and jnp.allclose(b_fc, b_ref3)

    print("KERNEL_OK")
</pallas_src>

<mosaic_0001>
module attributes {stable_mosaic.version = 11 : i64} {
  func.func @_fused_generator_kernel(%arg0: i32, %arg1: memref<512x16xf32, #tpu.memory_space<vmem>>, %arg2: memref<16x128xf32, #tpu.memory_space<vmem>>, %arg3: memref<1x128xf32, #tpu.memory_space<vmem>>, %arg4: memref<128x128xf32, #tpu.memory_space<vmem>>, %arg5: memref<1x128xf32, #tpu.memory_space<vmem>>, %arg6: memref<128x128xf32, #tpu.memory_space<vmem>>, %arg7: memref<1x128xf32, #tpu.memory_space<vmem>>, %arg8: memref<512x128xf32, #tpu.memory_space<vmem>>) attributes {dimension_semantics = [#tpu.dimension_semantics<parallel>], iteration_bounds = array<i64: 2>, scalar_prefetch = 0 : i64, scratch_operands = 0 : i64, tpu.core_type = #tpu.core_type<tc>, window_params = [{transform_indices = @transform_0, window_bounds = array<i64: 512, 16>}, {pipeline_mode = #tpu.pipeline_mode<synchronous>, transform_indices = @transform_1, window_bounds = array<i64: 16, 128>}, {pipeline_mode = #tpu.pipeline_mode<synchronous>, transform_indices = @transform_2, window_bounds = array<i64: 1, 128>}, {pipeline_mode = #tpu.pipeline_mode<synchronous>, transform_indices = @transform_3, window_bounds = array<i64: 128, 128>}, {pipeline_mode = #tpu.pipeline_mode<synchronous>, transform_indices = @transform_4, window_bounds = array<i64: 1, 128>}, {pipeline_mode = #tpu.pipeline_mode<synchronous>, transform_indices = @transform_5, window_bounds = array<i64: 128, 128>}, {pipeline_mode = #tpu.pipeline_mode<synchronous>, transform_indices = @transform_6, window_bounds = array<i64: 1, 128>}, {transform_indices = @transform_7, window_bounds = array<i64: 512, 128>}]} {
    %c0 = arith.constant 0 : index
    %c0_0 = arith.constant 0 : index
    %0 = vector.load %arg1[%c0, %c0_0] : memref<512x16xf32, #tpu.memory_space<vmem>>, vector<512x16xf32>
    %c0_1 = arith.constant 0 : index
    %c0_2 = arith.constant 0 : index
    %1 = vector.load %arg2[%c0_1, %c0_2] : memref<16x128xf32, #tpu.memory_space<vmem>>, vector<16x128xf32>
    %cst = arith.constant dense<0.000000e+00> : vector<512x128xf32>
    %2 = tpu.matmul %0, %1, %cst {dimension_numbers = #tpu.dot_dimension_numbers<[1], [0], [0], [1], [0, 0, 1, 1], [], []>} : vector<512x16xf32>, vector<16x128xf32>, vector<512x128xf32> -> vector<512x128xf32>
    %c0_3 = arith.constant 0 : index
    %c0_4 = arith.constant 0 : index
    %3 = vector.load %arg3[%c0_3, %c0_4] : memref<1x128xf32, #tpu.memory_space<vmem>>, vector<1x128xf32>
    %4 = vector.broadcast %3 : vector<1x128xf32> to vector<512x128xf32>
    %5 = arith.addf %2, %4 : vector<512x128xf32>
    %cst_5 = arith.constant 0.000000e+00 : f32
    %6 = vector.broadcast %cst_5 : f32 to vector<512x128xf32>
    %7 = arith.maximumf %5, %6 : vector<512x128xf32>
    %c0_6 = arith.constant 0 : index
    %c0_7 = arith.constant 0 : index
    %8 = vector.load %arg4[%c0_6, %c0_7] : memref<128x128xf32, #tpu.memory_space<vmem>>, vector<128x128xf32>
    %cst_8 = arith.constant dense<0.000000e+00> : vector<512x128xf32>
    %9 = tpu.matmul %7, %8, %cst_8 {dimension_numbers = #tpu.dot_dimension_numbers<[1], [0], [0], [1], [0, 0, 1, 1], [], []>} : vector<512x128xf32>, vector<128x128xf32>, vector<512x128xf32> -> vector<512x128xf32>
    %c0_9 = arith.constant 0 : index
    %c0_10 = arith.constant 0 : index
    %10 = vector.load %arg5[%c0_9, %c0_10] : memref<1x128xf32, #tpu.memory_space<vmem>>, vector<1x128xf32>
    %11 = vector.broadcast %10 : vector<1x128xf32> to vector<512x128xf32>
    %12 = arith.addf %9, %11 : vector<512x128xf32>
    %cst_11 = arith.constant 0.000000e+00 : f32
    %13 = vector.broadcast %cst_11 : f32 to vector<512x128xf32>
    %14 = arith.maximumf %12, %13 : vector<512x128xf32>
    %c0_12 = arith.constant 0 : index
    %c0_13 = arith.constant 0 : index
    %15 = vector.load %arg6[%c0_12, %c0_13] : memref<128x128xf32, #tpu.memory_space<vmem>>, vector<128x128xf32>
    %cst_14 = arith.constant dense<0.000000e+00> : vector<512x128xf32>
    %16 = tpu.matmul %14, %15, %cst_14 {dimension_numbers = #tpu.dot_dimension_numbers<[1], [0], [0], [1], [0, 0, 1, 1], [], []>} : vector<512x128xf32>, vector<128x128xf32>, vector<512x128xf32> -> vector<512x128xf32>
    %c0_15 = arith.constant 0 : index
    %c0_16 = arith.constant 0 : index
    %17 = vector.load %arg7[%c0_15, %c0_16] : memref<1x128xf32, #tpu.memory_space<vmem>>, vector<1x128xf32>
    %18 = vector.broadcast %17 : vector<1x128xf32> to vector<512x128xf32>
    %19 = arith.addf %16, %18 : vector<512x128xf32>
    %c0_17 = arith.constant 0 : index
    %c0_18 = arith.constant 0 : index
    %20 = vector.load %arg8[%c0_17, %c0_18] : memref<512x128xf32, #tpu.memory_space<vmem>>, vector<512x128xf32>
    tpu.vector_store %arg8[%c0_17, %c0_18], %19 {strides = array<i32>} : memref<512x128xf32, #tpu.memory_space<vmem>>, vector<512x128xf32>,
    return
  }
  func.func @transform_0(%arg0: i32) -> (i32, i32) {
    %c0_i32 = arith.constant 0 : i32
    %c0_i32_0 = arith.constant 0 : i32
    return %arg0, %c0_i32 : i32, i32
  }
  func.func @transform_1(%arg0: i32) -> (i32, i32) {
    %c0_i32 = arith.constant 0 : i32
    %c0_i32_0 = arith.constant 0 : i32
    %c0_i32_1 = arith.constant 0 : i32
    return %c0_i32, %c0_i32_0 : i32, i32
  }
  func.func @transform_2(%arg0: i32) -> (i32, i32) {
    %c0_i32 = arith.constant 0 : i32
    %c0_i32_0 = arith.constant 0 : i32
    %c0_i32_1 = arith.constant 0 : i32
    return %c0_i32, %c0_i32_0 : i32, i32
  }
  func.func @transform_3(%arg0: i32) -> (i32, i32) {
    %c0_i32 = arith.constant 0 : i32
    %c0_i32_0 = arith.constant 0 : i32
    %c0_i32_1 = arith.constant 0 : i32
    return %c0_i32, %c0_i32_0 : i32, i32
  }
  func.func @transform_4(%arg0: i32) -> (i32, i32) {
    %c0_i32 = arith.constant 0 : i32
    %c0_i32_0 = arith.constant 0 : i32
    %c0_i32_1 = arith.constant 0 : i32
    return %c0_i32, %c0_i32_0 : i32, i32
  }
  func.func @transform_5(%arg0: i32) -> (i32, i32) {
    %c0_i32 = arith.constant 0 : i32
    %c0_i32_0 = arith.constant 0 : i32
    %c0_i32_1 = arith.constant 0 : i32
    return %c0_i32, %c0_i32_0 : i32, i32
  }
  func.func @transform_6(%arg0: i32) -> (i32, i32) {
    %c0_i32 = arith.constant 0 : i32
    %c0_i32_0 = arith.constant 0 : i32
    %c0_i32_1 = arith.constant 0 : i32
    return %c0_i32, %c0_i32_0 : i32, i32
  }
  func.func @transform_7(%arg0: i32) -> (i32, i32) {
    %c0_i32 = arith.constant 0 : i32
    %c0_i32_0 = arith.constant 0 : i32
    return %arg0, %c0_i32 : i32, i32
  }
}

</mosaic_0001>

<bundles_post_ra>
// kernel: tpu_custom_call.1
= control target key start
LH: loop header
LB: loop body
LE: loop exit
PB: predicated region body
PF: predicated region fallthrough
CT: control target
= control target key end

     0   :  { %12 = vsyncpa [#allocation3], 0  ;;  %s3492_s0 = inlined_call_operand.vmem [shape: f32[1024,16], index: 0, kind: input, shape index: {}]   ;;  %s3493_s1 = inlined_call_operand.vmem [shape: f32[16,128], index: 1, kind: input, shape index: {}]   ;;  %s3494_s2 = inlined_call_operand.vmem [shape: f32[1,128], index: 2, kind: input, shape index: {}]   ;;  %s3495_s3 = inlined_call_operand.vmem [shape: f32[128,128], index: 3, kind: input, shape index: {}]   ;;  %s3496_s4 = inlined_call_operand.vmem [shape: f32[1,128], index: 4, kind: input, shape index: {}]   ;;  %s3497_s5 = inlined_call_operand.vmem [shape: f32[128,128], index: 5, kind: input, shape index: {}]   ;;  %s3498_s6 = inlined_call_operand.vmem [shape: f32[1,128], index: 6, kind: input, shape index: {}]   ;;  %s3499_s7 = inlined_call_operand.hbm [shape: f32[1024,128], index: 7, kind: output, shape index: {}]  }
   0x1   :  { %14 = vsyncpa [#allocation3 + $0x1], 0  ;;  %s2827_s24 = smov 0   ;;  %s2829_s25 = smov 0  }
   0x2   :  { %s2831_s26 = smov 0   ;;  %s2833_s27 = smov 0  }
   0x3 LB: > { %s2848_s28 = sadd.s32 4294967295, %s2782_s27   ;;  %s2015_s29 = sadd.s32 4294967294, %s2782_s27   ;;  %s2782_s27 = sphi %s2833_s27, %s3505_s27   ;;  %s2778_s26 = sphi %s2831_s26, %s3504_s26   ;;  %s2774_s25 = sphi %s2829_s25, %s3503_s25   ;;  %s2770_s24 = sphi %s2827_s24, %s3502_s24  }
   0x4   : > { %s2852_s30 = sadd.s32 1, %s2782_s27   ;;  %s179_s8 = sadd.s32 1, %s2778_s26 }
   0x5   : > { %s176_s9 = ssub.s32 %s2782_s27, %s2852_s30  ;;  %p189_p0 = scmp.ne.s32.totalorder %s2778_s26, %s2774_s25 }
   0x6   : > { %p177_p1 = scmp.eq.s32.totalorder %s176_s9, 0  ;;  %p190_p2 = scmp.eq.s32.totalorder %s2848_s28, 1 }
   0x7   : > { %p195_p3 = scmp.ne.s32.totalorder %s2774_s25, %s2770_s24  ;;  %p196_p4 = scmp.eq.s32.totalorder %s2015_s29, 1 }
   0x8   : > { %s2863_s10 = scalar_select %p177_p1, %s2778_s26, %s179_s8  }
   0x9   : > { %p2865_p5 = por %p190_p2, %p189_p0  ;;  %p2869_p6 = por %p196_p4, %p195_p3 }
   0xa   : > { %p2018_p7 = scmp.ge.s32.totalorder %s2782_s27, 1  ;;  %p241_p8 = scmp.lt.s32.totalorder %s2782_s27, 3 }
   0xc   : > { %p242_p9 = pnand %p2018_p7, %p241_p8 }
   0xd   : > { %s2020_s17 = sshll.u32 (!%p242_p9), %s2848_s28, 6  ;;  %s270_s21 = sand.u32 (!%p242_p9), 1, %s2774_s25  }
   0xe   : > { %245 = sbr.rel (%p242_p9) target bundleno = 760 (0x2f8), region = 48  ;;  %p274_p10 = scmp.lt.s32.totalorder (!%p242_p9), %s2020_s17, 127 }
   0xf   : > { %s2019_s22 = sshll.u32 (!%p242_p9), %s270_s21, 9  ;;  %s2094_s13 = sshll.u32 (!%p242_p9), %s2848_s28, 13 }
  0x10   : > { %s3312_s9 = scalar_lea.vmem (!%p242_p9), [#allocation2], %s2019_s22  ;;  %s3443_s16 = scalar_lea.hbm (!%p242_p9), %s3499_s7, %s2094_s13 }
  0x11   : > { %s1953_s14 = sshll.u32 (!%p242_p9), %s3312_s9, 4  ;;  %s3452_s28 = scalar_lea.sflag (!%p242_p9), [#allocation3], %s270_s21  ;;  %s3445_s14 = int_to_ptr.vmem [resolvable:$true] %s1953_s14 }
  0x12   : > { %s2784_s18 = smov (!%p242_p9), [#allocation2]  }
  0x13   : > { %v345_v0 = vld [vmem:[%s3493_s1 + $0x8] sm:$0xff]  ;;  %v344_v1 = vld [vmem:[%s3493_s1] sm:$0xff]  ;;  %v1010_v2 = vld [vmem:[%s3495_s3 + $0x78] sm:$0xff]  ;;  %s3507_s17 = smov (!%p274_p10, %s2020_s17), 127  ;;  %vm353_vm0 = vcmask 130048   ;;  %s2726_s19 = sshll.u32 %s2784_s18, 4  ;;  %s2727_s19 = int_to_ptr.vmem [resolvable:$false] %s2726_s19 }
  0x14   : > { %2321 = vmatprep.subr.mxu0 %v345_v0  ;;  %2677 = vmatprep.subr.mxu1 %v345_v0  ;;  %s2021_s20 = sshll.u32 %s3507_s17, 3  ;;  %v1009_v11 = vld [vmem:[%s3495_s3 + $0x70] sm:$0xff]  ;;  %v1008_v17 = vld [vmem:[%s3495_s3 + $0x68] sm:$0xff]  ;;  %v1007_v20 = vld [vmem:[%s3495_s3 + $0x60] sm:$0xff]  ;;  %s2722_s17 = scalar_lea.vmem %s3445_s14, 8192 }
  0x15   : > { %2322 = vmatpush3.msra.mxu0 %v345_v0  ;;  %2679 = vmatpush3.msra.mxu1 %v345_v0  ;;  %s2888_s23 = scalar_lea.vmem %s3492_s0, %s2021_s20  ;;  %v1006_v23 = vld [vmem:[%s3495_s3 + $0x58] sm:$0xff]  ;;  %v1005_v26 = vld [vmem:[%s3495_s3 + $0x50] sm:$0xff]  ;;  %v1004_v29 = vld [vmem:[%s3495_s3 + $0x48] sm:$0xff]  ;;  %p2723_p11 = scmp.ne.s32.totalorder %s3445_s14, %s2722_s17 }
  0x16   : > { %2323 = vmatprep.subr.mxu0 %v344_v1  ;;  %2678 = vmatprep.subr.mxu1 %v344_v1  ;;  %v280_v3 = vld [vmem:[%s2888_s23] sm:$0xff]  ;;  %v281_v4 = vld [vmem:[%s2888_s23 + $0x8] sm:$0xff]  ;;  %v282_v5 = vld [vmem:[%s2888_s23 + $0x10] sm:$0xff]  ;;  %s2728_s20 = scalar_lea.vmem %s2727_s19, 16384  ;;  %p2729_p0 = scmp.lt.s32.totalorder %s3445_s14, %s2727_s19 }
  0x17   : > { %2324 = vmatpush3.msra.mxu0 %v344_v1  ;;  %2680 = vmatpush3.msra.mxu1 %v344_v1  ;;  %v283_v6 = vld [vmem:[%s2888_s23 + $0x18] sm:$0xff]  ;;  %v284_v7 = vld [vmem:[%s2888_s23 + $0x20] sm:$0xff]  ;;  %v285_v8 = vld [vmem:[%s2888_s23 + $0x28] sm:$0xff]  ;;  %p2724_p12 = pnand %p2723_p11, %p2865_p5  ;;  %p2730_p1 = scmp.lt.s32.totalorder %s2728_s20, %s2722_s17 }
  0x18   : > { %2421 = vmatprep.subr.mxu1 %v1010_v2  ;;  %2325 = vmatprep.mubr.msk.f32.mxu0 %vm353_vm0, %v280_v3  ;;  %v286_v9 = vld [vmem:[%s2888_s23 + $0x30] sm:$0xff]  ;;  %v312_v10 = vld [vmem:[%s2888_s23 + $0x100] sm:$0xff]  ;;  %v287_v12 = vld [vmem:[%s2888_s23 + $0x38] sm:$0xff] }
  0x19   : > { %2326 = vmatmul.mubr.msk.f32.vlgmr.msra.gmra.mxu0 %vm353_vm0, %v281_v4  ;;  %2373 = vmatprep.mubr.msk.f32.mxu1 %vm353_vm0, %v312_v10  ;;  %v313_v13 = vld [vmem:[%s2888_s23 + $0x108] sm:$0xff]  ;;  %v314_v14 = vld [vmem:[%s2888_s23 + $0x110] sm:$0xff]  ;;  %v288_v15 = vld [vmem:[%s2888_s23 + $0x40] sm:$0xff]  ;;  %p2725_p13 = pneg %p2724_p12  ;;  %p2731_p2 = por %p2730_p1, %p2729_p0 }
  0x1a   : > { %2328 = vmatprep.mubr.msk.f32.mxu0 %vm353_vm0, %v282_v5  ;;  %2374 = vmatmul.mubr.msk.f32.vlgmr.msra.gmra.mxu1 %vm353_vm0, %v313_v13  ;;  %v315_v16 = vld [vmem:[%s2888_s23 + $0x118] sm:$0xff]  ;;  %v316_v18 = vld [vmem:[%s2888_s23 + $0x120] sm:$0xff]  ;;  %v289_v19 = vld [vmem:[%s2888_s23 + $0x48] sm:$0xff] }
  0x1b   : > { %2376 = vmatprep.mubr.msk.f32.mxu1 %vm353_vm0, %v314_v14  ;;  %2422 = vmatpush3.msra.mxu1 %v1010_v2  ;;  %v290_v21 = vld [vmem:[%s2888_s23 + $0x50] sm:$0xff]  ;;  %v317_v22 = vld [vmem:[%s2888_s23 + $0x128] sm:$0xff]  ;;  %v291_v25 = vld [vmem:[%s2888_s23 + $0x58] sm:$0xff]  ;;  %p2732_p3 = pnand %p2731_p2, %p2725_p13 }
  0x1c   : > { %2423 = vmatprep.subr.mxu1 %v1009_v11  ;;  %v318_v24 = vld [vmem:[%s2888_s23 + $0x130] sm:$0xff]  ;;  %v292_v27 = vld [vmem:[%s2888_s23 + $0x60] sm:$0xff]  ;;  %v319_v28 = vld [vmem:[%s2888_s23 + $0x138] sm:$0xff] }
  0x1d   : > { %2329 = vmatmul.mubr.msk.f32.gmra.mxu0 %vm353_vm0, %v283_v6  ;;  %2424 = vmatpush3.msra.mxu1 %v1009_v11  ;;  %v320_v30 = vld [vmem:[%s2888_s23 + $0x140] sm:$0xff]  ;;  %v293_v31 = vld [vmem:[%s2888_s23 + $0x68] sm:$0xff]  ;;  %v294_v33 = vld [vmem:[%s2888_s23 + $0x70] sm:$0xff] }
  0x1e   : > { %2331 = vmatprep.mubr.msk.f32.mxu0 %vm353_vm0, %v284_v7  ;;  %2377 = vmatmul.mubr.msk.f32.gmra.mxu1 %vm353_vm0, %v315_v16  ;;  %v1003_v32 = vld [vmem:[%s3495_s3 + $0x40] sm:$0xff]  ;;  %v321_v34 = vld [vmem:[%s2888_s23 + $0x148] sm:$0xff]  ;;  %v1002_v35 = vld [vmem:[%s3495_s3 + $0x38] sm:$0xff] }
  0x1f   : > { %2425 = vmatprep.subr.mxu1 %v1008_v17  ;;  %2379 = vmatprep.mubr.msk.f32.mxu1 %vm353_vm0, %v316_v18  ;;  %v322_v36 = vld [vmem:[%s2888_s23 + $0x150] sm:$0xff]  ;;  %v295_v37 = vld [vmem:[%s2888_s23 + $0x78] sm:$0xff]  ;;  %v296_v39 = vld [vmem:[%s2888_s23 + $0x80] sm:$0xff] }
  0x20   : > { %2426 = vmatpush3.msra.mxu1 %v1008_v17  ;;  %v1001_v38 = vld [vmem:[%s3495_s3 + $0x30] sm:$0xff]  ;;  %v323_v40 = vld [vmem:[%s2888_s23 + $0x158] sm:$0xff]  ;;  %v1000_v41 = vld [vmem:[%s3495_s3 + $0x28] sm:$0xff] }
  0x21   : > { %2332 = vmatmul.mubr.msk.f32.gmra.mxu0 %vm353_vm0, %v285_v8  ;;  %2427 = vmatprep.subr.mxu1 %v1007_v20  ;;  %v324_v42 = vld [vmem:[%s2888_s23 + $0x160] sm:$0xff]  ;;  %v297_v43 = vld [vmem:[%s2888_s23 + $0x88] sm:$0xff]  ;;  %v298_v45 = vld [vmem:[%s2888_s23 + $0x90] sm:$0xff] }
  0x22   : > { %2334 = vmatprep.mubr.msk.f32.mxu0 %vm353_vm0, %v286_v9  ;;  %2428 = vmatpush3.msra.mxu1 %v1007_v20  ;;  %v999_v44 = vld [vmem:[%s3495_s3 + $0x20] sm:$0xff]  ;;  %v325_v46 = vld [vmem:[%s2888_s23 + $0x168] sm:$0xff]  ;;  %v998_v47 = vld [vmem:[%s3495_s3 + $0x18] sm:$0xff] }
  0x23   : > { %2380 = vmatmul.mubr.msk.f32.gmra.mxu1 %vm353_vm0, %v317_v22  ;;  %2429 = vmatprep.subr.mxu1 %v1006_v23  ;;  %v326_v48 = vld [vmem:[%s2888_s23 + $0x170] sm:$0xff]  ;;  %v299_v49 = vld [vmem:[%s2888_s23 + $0x98] sm:$0xff]  ;;  %v300_v51 = vld [vmem:[%s2888_s23 + $0xa0] sm:$0xff] }
  0x24   : > { %2382 = vmatprep.mubr.msk.f32.mxu1 %vm353_vm0, %v318_v24  ;;  %2430 = vmatpush3.msra.mxu1 %v1006_v23  ;;  %v997_v50 = vld [vmem:[%s3495_s3 + $0x10] sm:$0xff]  ;;  %v327_v52 = vld [vmem:[%s2888_s23 + $0x178] sm:$0xff]  ;;  %v996_v53 = vld [vmem:[%s3495_s3 + $0x8] sm:$0xff] }
  0x25   : > { %2335 = vmatmul.mubr.msk.f32.gmra.mxu0 %vm353_vm0, %v287_v12  ;;  %2431 = vmatprep.subr.mxu1 %v1005_v26  ;;  %v328_v54 = vld [vmem:[%s2888_s23 + $0x180] sm:$0xff]  ;;  %v301_v55 = vld [vmem:[%s2888_s23 + $0xa8] sm:$0xff]  ;;  %v302_v56 = vld [vmem:[%s2888_s23 + $0xb0] sm:$0xff] }
  0x26   : > { %2337 = vmatprep.mubr.msk.f32.mxu0 %vm353_vm0, %v288_v15  ;;  %2432 = vmatpush3.msra.mxu1 %v1005_v26  ;;  %v329_v57 = vld [vmem:[%s2888_s23 + $0x188] sm:$0xff]  ;;  %v330_v58 = vld [vmem:[%s2888_s23 + $0x190] sm:$0xff]  ;;  %v303_v59 = vld [vmem:[%s2888_s23 + $0xb8] sm:$0xff] }
  0x27   : > { %2383 = vmatmul.mubr.msk.f32.gmra.mxu1 %vm353_vm0, %v319_v28  ;;  %2433 = vmatprep.subr.mxu1 %v1004_v29  ;;  %v304_v60 = vld [vmem:[%s2888_s23 + $0xc0] sm:$0xff]  ;;  %v331_v61 = vld [vmem:[%s2888_s23 + $0x198] sm:$0xff]  ;;  %v305_v63 = vld [vmem:[%s2888_s23 + $0xc8] sm:$0xff] }
  0x28   : > { %2385 = vmatprep.mubr.msk.f32.mxu1 %vm353_vm0, %v320_v30  ;;  %2434 = vmatpush3.msra.mxu1 %v1004_v29  ;;  %v332_v62 = vld [vmem:[%s2888_s23 + $0x1a0] sm:$0xff]  ;;  %v306_v0 = vld [vmem:[%s2888_s23 + $0xd0] sm:$0xff]  ;;  %v333_v1 = vld [vmem:[%s2888_s23 + $0x1a8] sm:$0xff] }
  0x29   : > { %2338 = vmatmul.mubr.msk.f32.gmra.mxu0 %vm353_vm0, %v289_v19  ;;  %2435 = vmatprep.subr.mxu1 %v1003_v32  ;;  %v334_v2 = vld [vmem:[%s2888_s23 + $0x1b0] sm:$0xff]  ;;  %v307_v3 = vld [vmem:[%s2888_s23 + $0xd8] sm:$0xff]  ;;  %v308_v4 = vld [vmem:[%s2888_s23 + $0xe0] sm:$0xff] }
  0x2a   : > { %2340 = vmatprep.mubr.msk.f32.mxu0 %vm353_vm0, %v290_v21  ;;  %2436 = vmatpush3.msra.mxu1 %v1003_v32  ;;  %v335_v5 = vld [vmem:[%s2888_s23 + $0x1b8] sm:$0xff]  ;;  %v336_v6 = vld [vmem:[%s2888_s23 + $0x1c0] sm:$0xff]  ;;  %v309_v7 = vld [vmem:[%s2888_s23 + $0xe8] sm:$0xff] }
  0x2b   : > { %2386 = vmatmul.mubr.msk.f32.gmra.mxu1 %vm353_vm0, %v321_v34  ;;  %2437 = vmatprep.subr.mxu1 %v1002_v35  ;;  %v310_v8 = vld [vmem:[%s2888_s23 + $0xf0] sm:$0xff]  ;;  %v337_v9 = vld [vmem:[%s2888_s23 + $0x1c8] sm:$0xff]  ;;  %v311_v11 = vld [vmem:[%s2888_s23 + $0xf8] sm:$0xff] }
  0x2c   : > { %2388 = vmatprep.mubr.msk.f32.mxu1 %vm353_vm0, %v322_v36  ;;  %2438 = vmatpush3.msra.mxu1 %v1002_v35  ;;  %v338_v10 = vld [vmem:[%s2888_s23 + $0x1d0] sm:$0xff]  ;;  %v339_v12 = vld [vmem:[%s2888_s23 + $0x1d8] sm:$0xff]  ;;  %v340_v13 = vld [vmem:[%s2888_s23 + $0x1e0] sm:$0xff] }
  0x2d   : > { %2341 = vmatmul.mubr.msk.f32.gmra.mxu0 %vm353_vm0, %v291_v25  ;;  %2439 = vmatprep.subr.mxu1 %v1001_v38  ;;  %v341_v14 = vld [vmem:[%s2888_s23 + $0x1e8] sm:$0xff]  ;;  %v342_v15 = vld [vmem:[%s2888_s23 + $0x1f0] sm:$0xff]  ;;  %v343_v16 = vld [vmem:[%s2888_s23 + $0x1f8] sm:$0xff] }
  0x2e   : > { %2343 = vmatprep.mubr.msk.f32.mxu0 %vm353_vm0, %v292_v27  ;;  %2440 = vmatpush3.msra.mxu1 %v1001_v38  ;;  %v995_v17 = vld [vmem:[%s3495_s3] sm:$0xff]  ;;  %v1482_v24 = vld [vmem:[%s3497_s5 + $0x78] sm:$0xff]  ;;  %v1481_v25 = vld [vmem:[%s3497_s5 + $0x70] sm:$0xff] }
  0x2f   : > { %2389 = vmatmul.mubr.msk.f32.gmra.mxu1 %vm353_vm0, %v323_v40  ;;  %2441 = vmatprep.subr.mxu1 %v1000_v41  ;;  %v3066_v18 = vld [vmem:[%s3494_s2] ss:$0 sm:$0xff]  ;;  %v1480_v30 = vld [vmem:[%s3497_s5 + $0x68] sm:$0xff] }
  0x30   : > { %2391 = vmatprep.mubr.msk.f32.mxu1 %vm353_vm0, %v324_v42  ;;  %2442 = vmatpush3.msra.mxu1 %v1000_v41 }
  0x31   : > { %2344 = vmatmul.mubr.msk.f32.gmra.mxu0 %vm353_vm0, %v293_v31  ;;  %2443 = vmatprep.subr.mxu1 %v999_v44 }
  0x32   : > { %2346 = vmatprep.mubr.msk.f32.mxu0 %vm353_vm0, %v294_v33  ;;  %2444 = vmatpush3.msra.mxu1 %v999_v44  ;;  %v1479_v33 = vld [vmem:[%s3497_s5 + $0x60] sm:$0xff] }
  0x33   : > { %2392 = vmatmul.mubr.msk.f32.gmra.mxu1 %vm353_vm0, %v325_v46  ;;  %2445 = vmatprep.subr.mxu1 %v998_v47 }
  0x34   : > { %2394 = vmatprep.mubr.msk.f32.mxu1 %vm353_vm0, %v326_v48  ;;  %2446 = vmatpush3.msra.mxu1 %v998_v47 }
  0x35   : > { %2347 = vmatmul.mubr.msk.f32.gmra.mxu0 %vm353_vm0, %v295_v37  ;;  %2447 = vmatprep.subr.mxu1 %v997_v50 }
  0x36   : > { %2349 = vmatprep.mubr.msk.f32.mxu0 %vm353_vm0, %v296_v39  ;;  %2448 = vmatpush3.msra.mxu1 %v997_v50  ;;  %v1478_v39 = vld [vmem:[%s3497_s5 + $0x58] sm:$0xff] }
  0x37   : > { %2395 = vmatmul.mubr.msk.f32.gmra.mxu1 %vm353_vm0, %v327_v52  ;;  %2449 = vmatprep.subr.mxu1 %v996_v53 }
  0x38   : > { %2397 = vmatprep.mubr.msk.f32.mxu1 %vm353_vm0, %v328_v54  ;;  %2450 = vmatpush3.msra.mxu1 %v996_v53  ;;  %v1475_v53 = vld [vmem:[%s3497_s5 + $0x40] sm:$0xff] }
  0x39   : > { %2350 = vmatmul.mubr.msk.f32.gmra.mxu0 %vm353_vm0, %v297_v43  ;;  %2451 = vmatprep.subr.mxu1 %v995_v17  ;;  %v1477_v43 = vld [vmem:[%s3497_s5 + $0x50] sm:$0xff] }
  0x3a   : > { %2352 = vmatprep.mubr.msk.f32.mxu0 %vm353_vm0, %v298_v45  ;;  %2452 = vmatpush3.msra.mxu1 %v995_v17 }
  0x3b   : > { %2398 = vmatmul.mubr.msk.f32.gmra.mxu1 %vm353_vm0, %v329_v57  ;;  %2549 = vmatprep.subr.mxu0 %v1482_v24 }
  0x3c   : > { %2400 = vmatprep.mubr.msk.f32.mxu1 %vm353_vm0, %v330_v58  ;;  %2550 = vmatpush3.msra.mxu0 %v1482_v24 }
  0x3d   : > { %2353 = vmatmul.mubr.msk.f32.gmra.mxu0 %vm353_vm0, %v299_v49  ;;  %2551 = vmatprep.subr.mxu0 %v1481_v25  ;;  %v1476_v49 = vld [vmem:[%s3497_s5 + $0x48] sm:$0xff] }
  0x3e   : > { %2355 = vmatprep.mubr.msk.f32.mxu0 %vm353_vm0, %v300_v51  ;;  %2552 = vmatpush3.msra.mxu0 %v1481_v25  ;;  %v1468_v25 = vld [vmem:[%s3497_s5 + $0x8] sm:$0xff] }
  0x3f   : > { %2401 = vmatmul.mubr.msk.f32.gmra.mxu1 %vm353_vm0, %v331_v61  ;;  %2553 = vmatprep.subr.mxu0 %v1480_v30 }
  0x40   : > { %2403 = vmatprep.mubr.msk.f32.mxu1 %vm353_vm0, %v332_v62  ;;  %2554 = vmatpush3.msra.mxu0 %v1480_v30 }
  0x41   : > { %2356 = vmatmul.mubr.msk.f32.gmra.mxu0 %vm353_vm0, %v301_v55  ;;  %2555 = vmatprep.subr.mxu0 %v1479_v33 }
  0x42   : > { %2358 = vmatprep.mubr.msk.f32.mxu0 %vm353_vm0, %v302_v56  ;;  %2556 = vmatpush3.msra.mxu0 %v1479_v33 }
  0x43   : > { %2404 = vmatmul.mubr.msk.f32.gmra.mxu1 %vm353_vm0, %v333_v1  ;;  %2557 = vmatprep.subr.mxu0 %v1478_v39 }
  0x44   : > { %2406 = vmatprep.mubr.msk.f32.mxu1 %vm353_vm0, %v334_v2  ;;  %2558 = vmatpush3.msra.mxu0 %v1478_v39 }
  0x45   : > { %2359 = vmatmul.mubr.msk.f32.gmra.mxu0 %vm353_vm0, %v303_v59  ;;  %2559 = vmatprep.subr.mxu0 %v1477_v43  ;;  %v1474_v59 = vld [vmem:[%s3497_s5 + $0x38] sm:$0xff] }
  0x46   : > { %2361 = vmatprep.mubr.msk.f32.mxu0 %vm353_vm0, %v304_v60  ;;  %2560 = vmatpush3.msra.mxu0 %v1477_v43 }
  0x47   : > { %2407 = vmatmul.mubr.msk.f32.gmra.mxu1 %vm353_vm0, %v335_v5  ;;  %2561 = vmatprep.subr.mxu0 %v1476_v49  ;;  %v1472_v5 = vld [vmem:[%s3497_s5 + $0x28] sm:$0xff] }
  0x48   : > { %2409 = vmatprep.mubr.msk.f32.mxu1 %vm353_vm0, %v336_v6  ;;  %2562 = vmatpush3.msra.mxu0 %v1476_v49 }
  0x49   : > { %2362 = vmatmul.mubr.msk.f32.gmra.mxu0 %vm353_vm0, %v305_v63  ;;  %2563 = vmatprep.subr.mxu0 %v1475_v53  ;;  %v1473_v63 = vld [vmem:[%s3497_s5 + $0x30] sm:$0xff] }
  0x4a   : > { %2364 = vmatprep.mubr.msk.f32.mxu0 %vm353_vm0, %v306_v0  ;;  %2564 = vmatpush3.msra.mxu0 %v1475_v53 }
  0x4b   : > { %2410 = vmatmul.mubr.msk.f32.gmra.mxu1 %vm353_vm0, %v337_v9  ;;  %2565 = vmatprep.subr.mxu0 %v1474_v59  ;;  %v1471_v9 = vld [vmem:[%s3497_s5 + $0x20] sm:$0xff] }
  0x4c   : > { %2412 = vmatprep.mubr.msk.f32.mxu1 %vm353_vm0, %v338_v10  ;;  %2566 = vmatpush3.msra.mxu0 %v1474_v59 }
  0x4d   : > { %2365 = vmatmul.mubr.msk.f32.gmra.mxu0 %vm353_vm0, %v307_v3  ;;  %2567 = vmatprep.subr.mxu0 %v1473_v63 }
  0x4e   : > { %2367 = vmatprep.mubr.msk.f32.mxu0 %vm353_vm0, %v308_v4  ;;  %2568 = vmatpush3.msra.mxu0 %v1473_v63 }
  0x4f   : > { %2413 = vmatmul.mubr.msk.f32.gmra.mxu1 %vm353_vm0, %v339_v12  ;;  %2569 = vmatprep.subr.mxu0 %v1472_v5 }
  0x50   : > { %2415 = vmatprep.mubr.msk.f32.mxu1 %vm353_vm0, %v340_v13  ;;  %2570 = vmatpush3.msra.mxu0 %v1472_v5 }
  0x51   : > { %2368 = vmatmul.mubr.msk.f32.gmra.mxu0 %vm353_vm0, %v309_v7  ;;  %2571 = vmatprep.subr.mxu0 %v1471_v9 }
  0x52   : > { %2370 = vmatprep.mubr.msk.f32.mxu0 %vm353_vm0, %v310_v8  ;;  %2572 = vmatpush3.msra.mxu0 %v1471_v9 }
  0x53   : > { %2416 = vmatmul.mubr.msk.f32.gmra.mxu1 %vm353_vm0, %v341_v14 }
  0x54   : > { %2418 = vmatprep.mubr.msk.f32.mxu1 %vm353_vm0, %v342_v15  ;;  %v1470_v15 = vld [vmem:[%s3497_s5 + $0x18] sm:$0xff] }
  0x55   : > { %2371 = vmatmul.mubr.msk.f32.gmra.mxu0 %vm353_vm0, %v311_v11  ;;  %2573 = vmatprep.subr.mxu0 %v1470_v15 }
  0x56   : > { %2574 = vmatpush3.msra.mxu0 %v1470_v15 }
  0x57   : > { %2419 = vmatmul.mubr.msk.f32.gmra.mxu1 %vm353_vm0, %v343_v16 }
  0xd9   : > { %v2327_v19 = vpop.f32.mrf.mxu0 }
  0xda   : > { %v618_v20 = vadd.f32 %v2327_v19, %v3066_v18  ;;  %v3085_v38 = vpop.f32.mrf.mxu1  ;;  %v1469_v19 = vld [vmem:[%s3497_s5 + $0x10] sm:$0xff] }
  0xdb   : > { %v612_v21 = vpop.f32.mrf.mxu0  ;;  %2575 = vmatprep.subr.mxu0 %v1469_v19 }
  0xdc   : > { %v613_v22 = vadd.f32 %v3066_v18, %v612_v21  ;;  %v932_v27 = vmax.f32 %v618_v20, 0.0  ;;  %v3091_v42 = vpop.f32.mrf.mxu1  ;;  %2576 = vmatpush3.msra.mxu0 %v1469_v19 }
  0xdd   : > { %v2330_v23 = vpop.f32.mrf.mxu0  ;;  %2577 = vmatprep.subr.mxu0 %v1468_v25 }
  0xde   : > { %v931_v26 = vmax.f32 %v613_v22, 0.0  ;;  %v628_v28 = vadd.f32 %v2330_v23, %v3066_v18  ;;  %v3097_v48 = vpop.f32.mrf.mxu1  ;;  %2578 = vmatpush3.msra.mxu0 %v1468_v25  ;;  %v773_v25 = vadd.f32 %v3066_v18, %v3091_v42 }
  0xdf   : > { %v622_v29 = vpop.f32.mrf.mxu0 }
  0xe0   : > { %v623_v31 = vadd.f32 %v3066_v18, %v622_v29  ;;  %2453 = vmatprep.mubr.f32.mxu1 %v931_v26  ;;  %v934_v35 = vmax.f32 %v628_v28, 0.0  ;;  %v3103_v52 = vpop.f32.mrf.mxu1 }
  0xe1   : > { %v2333_v32 = vpop.f32.mrf.mxu0  ;;  %2454 = vmatmul.mubr.f32.vlgmr.msra.gmra.mxu1 %v932_v27 }
  0xe2   : > { %v933_v34 = vmax.f32 %v623_v31, 0.0  ;;  %v638_v36 = vadd.f32 %v2333_v32, %v3066_v18 }
  0xe3   : > { %v632_v37 = vpop.f32.mrf.mxu0  ;;  %v3109_v58 = vpop.f32.mrf.mxu1 }
  0xe4   : > { %v633_v40 = vadd.f32 %v3066_v18, %v632_v37  ;;  %2456 = vmatprep.mubr.f32.mxu1 %v933_v34  ;;  %v936_v45 = vmax.f32 %v638_v36, 0.0 }
  0xe5   : > { %v2336_v41 = vpop.f32.mrf.mxu0  ;;  %2457 = vmatmul.mubr.f32.gmra.mxu1 %v934_v35  ;;  %v3115_v62 = vpop.f32.mrf.mxu1 }
  0xe6   : > { %v935_v44 = vmax.f32 %v633_v40, 0.0  ;;  %v648_v46 = vadd.f32 %v2336_v41, %v3066_v18 }
  0xe7   : > { %v642_v47 = vpop.f32.mrf.mxu0  ;;  %v3121_v4 = vpop.f32.mrf.mxu1 }
  0xe8   : > { %v643_v50 = vadd.f32 %v3066_v18, %v642_v47  ;;  %2459 = vmatprep.mubr.f32.mxu1 %v935_v44  ;;  %v938_v55 = vmax.f32 %v648_v46, 0.0 }
  0xe9   : > { %v2339_v51 = vpop.f32.mrf.mxu0  ;;  %2460 = vmatmul.mubr.f32.gmra.mxu1 %v936_v45  ;;  %v3127_v8 = vpop.f32.mrf.mxu1 }
  0xea   : > { %v937_v54 = vmax.f32 %v643_v50, 0.0  ;;  %v658_v56 = vadd.f32 %v2339_v51, %v3066_v18 }
  0xeb   : > { %v652_v57 = vpop.f32.mrf.mxu0  ;;  %v3133_v14 = vpop.f32.mrf.mxu1 }
  0xec   : > { %v653_v60 = vadd.f32 %v3066_v18, %v652_v57  ;;  %2462 = vmatprep.mubr.f32.mxu1 %v937_v54  ;;  %v940_v1 = vmax.f32 %v658_v56, 0.0 }
  0xed   : > { %v2342_v61 = vpop.f32.mrf.mxu0  ;;  %2463 = vmatmul.mubr.f32.gmra.mxu1 %v938_v55  ;;  %v3143_v24 = vpop.f32.mrf.mxu1 }
  0xee   : > { %v939_v0 = vmax.f32 %v653_v60, 0.0  ;;  %v668_v2 = vadd.f32 %v2342_v61, %v3066_v18 }
  0xef   : > { %v662_v3 = vpop.f32.mrf.mxu0  ;;  %v3150_v32 = vpop.f32.mrf.mxu1 }
  0xf0   : > { %v663_v6 = vadd.f32 %v3066_v18, %v662_v3  ;;  %2465 = vmatprep.mubr.f32.mxu1 %v939_v0  ;;  %v942_v11 = vmax.f32 %v668_v2, 0.0 }
  0xf1   : > { %v2345_v7 = vpop.f32.mrf.mxu0  ;;  %2466 = vmatmul.mubr.f32.gmra.mxu1 %v940_v1  ;;  %v3154_v40 = vpop.f32.mrf.mxu1 }
  0xf2   : > { %v941_v10 = vmax.f32 %v663_v6, 0.0  ;;  %v678_v12 = vadd.f32 %v2345_v7, %v3066_v18 }
  0xf3   : > { %v672_v13 = vpop.f32.mrf.mxu0  ;;  %v3158_v49 = vpop.f32.mrf.mxu1 }
  0xf4   : > { %v673_v16 = vadd.f32 %v3066_v18, %v672_v13  ;;  %2468 = vmatprep.mubr.f32.mxu1 %v941_v10  ;;  %v944_v21 = vmax.f32 %v678_v12, 0.0 }
  0xf5   : > { %v2348_v17 = vpop.f32.mrf.mxu0  ;;  %2469 = vmatmul.mubr.f32.gmra.mxu1 %v942_v11  ;;  %v3162_v57 = vpop.f32.mrf.mxu1 }
  0xf6   : > { %v943_v20 = vmax.f32 %v673_v16, 0.0  ;;  %v688_v22 = vadd.f32 %v2348_v17, %v3066_v18 }
  0xf7   : > { %v682_v23 = vpop.f32.mrf.mxu0  ;;  %v3166_v2 = vpop.f32.mrf.mxu1 }
  0xf8   : > { %v683_v26 = vadd.f32 %v3066_v18, %v682_v23  ;;  %2471 = vmatprep.mubr.f32.mxu1 %v943_v20  ;;  %v946_v29 = vmax.f32 %v688_v22, 0.0 }
  0xf9   : > { %v2351_v27 = vpop.f32.mrf.mxu0  ;;  %2472 = vmatmul.mubr.f32.gmra.mxu1 %v944_v21  ;;  %v3170_v11 = vpop.f32.mrf.mxu1 }
  0xfa   : > { %v945_v28 = vmax.f32 %v683_v26, 0.0  ;;  %v698_v30 = vadd.f32 %v2351_v27, %v3066_v18 }
  0xfb   : > { %v692_v31 = vpop.f32.mrf.mxu0  ;;  %v3174_v20 = vpop.f32.mrf.mxu1 }
  0xfc   : > { %v693_v33 = vadd.f32 %v3066_v18, %v692_v31  ;;  %2474 = vmatprep.mubr.f32.mxu1 %v945_v28  ;;  %v948_v36 = vmax.f32 %v698_v30, 0.0 }
  0xfd   : > { %v2354_v34 = vpop.f32.mrf.mxu0  ;;  %2475 = vmatmul.mubr.f32.gmra.mxu1 %v946_v29  ;;  %v852_v29 = vpop.f32.mrf.mxu1 }
  0xfe   : > { %v947_v35 = vmax.f32 %v693_v33, 0.0  ;;  %v708_v37 = vadd.f32 %v2354_v34, %v3066_v18  ;;  %v963_v33 = vmax.f32 %v773_v25, 0.0  ;;  %v783_v34 = vadd.f32 %v3066_v18, %v3103_v52 }
  0xff   : > { %v702_v39 = vpop.f32.mrf.mxu0 }
 0x100   : > { %v703_v41 = vadd.f32 %v3066_v18, %v702_v39  ;;  %2477 = vmatprep.mubr.f32.mxu1 %v947_v35  ;;  %v950_v45 = vmax.f32 %v708_v37, 0.0  ;;  %v3185_v37 = vpop.f32.mrf.mxu1  ;;  %v965_v42 = vmax.f32 %v783_v34, 0.0  ;;  %v793_v39 = vadd.f32 %v3066_v18, %v3115_v62 }
 0x101   : > { %v2357_v43 = vpop.f32.mrf.mxu0  ;;  %2478 = vmatmul.mubr.f32.gmra.mxu1 %v948_v36  ;;  %v778_v36 = vadd.f32 %v3085_v38, %v3066_v18  ;;  %v803_v38 = vadd.f32 %v3066_v18, %v3127_v8  ;;  %v813_v62 = vadd.f32 %v3066_v18, %v3143_v24  ;;  %v818_v24 = vadd.f32 %v3133_v14, %v3066_v18 }
 0x102   : > { %v949_v44 = vmax.f32 %v703_v41, 0.0  ;;  %v718_v46 = vadd.f32 %v2357_v43, %v3066_v18  ;;  %v788_v43 = vadd.f32 %v3097_v48, %v3066_v18  ;;  %v967_v52 = vmax.f32 %v793_v39, 0.0  ;;  %v1467_v48 = vld [vmem:[%s3497_s5] sm:$0xff] }
 0x103   : > { %v712_v47 = vpop.f32.mrf.mxu0  ;;  %v964_v41 = vmax.f32 %v778_v36, 0.0  ;;  %2579 = vmatprep.subr.mxu0 %v1467_v48  ;;  %v838_v14 = vadd.f32 %v3158_v49, %v3066_v18  ;;  %v858_v49 = vadd.f32 %v3174_v20, %v3066_v18 }
 0x104   : > { %v713_v50 = vadd.f32 %v3066_v18, %v712_v47  ;;  %2480 = vmatprep.mubr.f32.mxu1 %v949_v44  ;;  %v952_v54 = vmax.f32 %v718_v46, 0.0  ;;  %v862_v44 = vpop.f32.mrf.mxu1  ;;  %v798_v46 = vadd.f32 %v3109_v58, %v3066_v18  ;;  %2580 = vmatpush3.msra.mxu0 %v1467_v48  ;;  %v971_v58 = vmax.f32 %v813_v62, 0.0  ;;  %v3237_v62 = vld [vmem:[%s3496_s4] ss:$0 sm:$0xff] }
 0x105   : > { %v2360_v51 = vpop.f32.mrf.mxu0  ;;  %2481 = vmatmul.mubr.f32.gmra.mxu1 %v950_v45  ;;  %v966_v45 = vmax.f32 %v788_v43, 0.0 }
 0x106   : > { %v951_v53 = vmax.f32 %v713_v50, 0.0  ;;  %v728_v55 = vadd.f32 %v2360_v51, %v3066_v18  ;;  %v2405_v47 = vpop.f32.mrf.mxu1  ;;  %v969_v50 = vmax.f32 %v803_v38, 0.0  ;;  %v968_v51 = vmax.f32 %v798_v46, 0.0 }
 0x107   : > { %v722_v56 = vpop.f32.mrf.mxu0 }
 0x108   : > { %v723_v59 = vadd.f32 %v3066_v18, %v722_v56  ;;  %2483 = vmatprep.mubr.f32.mxu1 %v951_v53  ;;  %v954_v63 = vmax.f32 %v728_v55, 0.0  ;;  %v808_v53 = vadd.f32 %v3121_v4, %v3066_v18  ;;  %v872_v8 = vpop.f32.mrf.mxu1  ;;  %v833_v4 = vadd.f32 %v3066_v18, %v3162_v57 }
 0x109   : > { %v2363_v60 = vpop.f32.mrf.mxu0  ;;  %2484 = vmatmul.mubr.f32.gmra.mxu1 %v952_v54  ;;  %v823_v54 = vadd.f32 %v3066_v18, %v3154_v40  ;;  %v843_v40 = vadd.f32 %v3066_v18, %v3170_v11  ;;  %v853_v57 = vadd.f32 %v3066_v18, %v852_v29 }
 0x10a   : > { %v953_v61 = vmax.f32 %v723_v59, 0.0  ;;  %v738_v0 = vadd.f32 %v2363_v60, %v3066_v18  ;;  %v970_v55 = vmax.f32 %v808_v53, 0.0  ;;  %v2408_v56 = vpop.f32.mrf.mxu1  ;;  %v972_v60 = vmax.f32 %v818_v24, 0.0 }
 0x10b   : > { %v732_v1 = vpop.f32.mrf.mxu0  ;;  %v973_v59 = vmax.f32 %v823_v54, 0.0 }
 0x10c   : > { %v733_v3 = vadd.f32 %v3066_v18, %v732_v1  ;;  %2486 = vmatprep.mubr.f32.mxu1 %v953_v61  ;;  %v956_v7 = vmax.f32 %v738_v0, 0.0  ;;  %v828_v61 = vadd.f32 %v3150_v32, %v3066_v18  ;;  %v975_v0 = vmax.f32 %v833_v4, 0.0 }
 0x10d   : > { %v2366_v5 = vpop.f32.mrf.mxu0  ;;  %2487 = vmatmul.mubr.f32.gmra.mxu1 %v954_v63  ;;  %v882_v63 = vpop.f32.mrf.mxu1  ;;  %v848_v32 = vadd.f32 %v3166_v2, %v3066_v18  ;;  %v868_v2 = vadd.f32 %v3185_v37, %v3066_v18 }
 0x10e   : > { %v955_v6 = vmax.f32 %v733_v3, 0.0  ;;  %v748_v9 = vadd.f32 %v2366_v5, %v3066_v18  ;;  %v974_v1 = vmax.f32 %v828_v61, 0.0  ;;  %v977_v5 = vmax.f32 %v843_v40, 0.0 }
 0x10f   : > { %v742_v10 = vpop.f32.mrf.mxu0  ;;  %v2411_v3 = vpop.f32.mrf.mxu1  ;;  %v978_v11 = vmax.f32 %v848_v32, 0.0 }
 0x110   : > { %v743_v12 = vadd.f32 %v3066_v18, %v742_v10  ;;  %2489 = vmatprep.mubr.f32.mxu1 %v955_v6  ;;  %v958_v16 = vmax.f32 %v748_v9, 0.0  ;;  %v976_v6 = vmax.f32 %v838_v14, 0.0  ;;  %v979_v9 = vmax.f32 %v853_v57, 0.0 }
 0x111   : > { %v2369_v13 = vpop.f32.mrf.mxu0  ;;  %2490 = vmatmul.mubr.f32.gmra.mxu1 %v956_v7  ;;  %v892_v7 = vpop.f32.mrf.mxu1  ;;  %v863_v10 = vadd.f32 %v3066_v18, %v862_v44  ;;  %v898_v34 = vadd.f32 %v2411_v3, %v3066_v18 }
 0x112   : > { %v957_v15 = vmax.f32 %v743_v12, 0.0  ;;  %v758_v17 = vadd.f32 %v2369_v13, %v3066_v18 }
 0x113   : > { %v752_v19 = vpop.f32.mrf.mxu0  ;;  %v2414_v12 = vpop.f32.mrf.mxu1  ;;  %v981_v13 = vmax.f32 %v863_v10, 0.0 }
 0x114   : > { %v753_v21 = vadd.f32 %v3066_v18, %v752_v19  ;;  %2492 = vmatprep.mubr.f32.mxu1 %v957_v15  ;;  %v960_v26 = vmax.f32 %v758_v17, 0.0  ;;  %v873_v15 = vadd.f32 %v3066_v18, %v872_v8  ;;  %v908_v39 = vadd.f32 %v2414_v12, %v3066_v18 }
 0x115   : > { %v2372_v22 = vpop.f32.mrf.mxu0  ;;  %2493 = vmatmul.mubr.f32.gmra.mxu1 %v958_v16  ;;  %v980_v16 = vmax.f32 %v858_v49, 0.0  ;;  %v902_v17 = vpop.f32.mrf.mxu1 }
 0x116   : > { %v959_v23 = vmax.f32 %v753_v21, 0.0  ;;  %v768_v27 = vadd.f32 %v2372_v22, %v3066_v18  ;;  %v983_v19 = vmax.f32 %v873_v15, 0.0  ;;  %v883_v21 = vadd.f32 %v3066_v18, %v882_v63 }
 0x117   : > { %v762_v28 = vpop.f32.mrf.mxu0  ;;  %v982_v22 = vmax.f32 %v868_v2, 0.0  ;;  %v2417_v20 = vpop.f32.mrf.mxu1 }
 0x118   : > { %v763_v30 = vadd.f32 %v3066_v18, %v762_v28  ;;  %2495 = vmatprep.mubr.f32.mxu1 %v959_v23  ;;  %v962_v35 = vmax.f32 %v768_v27, 0.0  ;;  %v878_v23 = vadd.f32 %v2405_v47, %v3066_v18  ;;  %v985_v25 = vmax.f32 %v883_v21, 0.0 }
 0x119   : > { %2496 = vmatmul.mubr.f32.gmra.mxu1 %v960_v26  ;;  %v893_v26 = vadd.f32 %v3066_v18, %v892_v7  ;;  %v888_v28 = vadd.f32 %v2408_v56, %v3066_v18  ;;  %v912_v29 = vpop.f32.mrf.mxu1  ;;  %v918_v38 = vadd.f32 %v2417_v20, %v3066_v18 }
 0x11a   : > { %v961_v31 = vmax.f32 %v763_v30, 0.0  ;;  %v984_v27 = vmax.f32 %v878_v23, 0.0  ;;  %v913_v37 = vadd.f32 %v3066_v18, %v912_v29 }
 0x11b   : > { %v987_v30 = vmax.f32 %v893_v26, 0.0  ;;  %v992_v46 = vmax.f32 %v918_v38, 0.0 }
 0x11c   : > { %2498 = vmatprep.mubr.f32.mxu1 %v961_v31  ;;  %v903_v31 = vadd.f32 %v3066_v18, %v902_v17  ;;  %v991_v43 = vmax.f32 %v913_v37, 0.0 }
 0x11d   : > { %2499 = vmatmul.mubr.f32.gmra.mxu1 %v962_v35  ;;  %v2420_v35 = vpop.f32.mrf.mxu1 }
 0x11e   : > { %2501 = vmatprep.mubr.f32.mxu1 %v963_v33  ;;  %v986_v33 = vmax.f32 %v888_v28, 0.0  ;;  %v989_v36 = vmax.f32 %v903_v31, 0.0  ;;  %v928_v47 = vadd.f32 %v2420_v35, %v3066_v18 }
 0x121   : > { %2502 = vmatmul.mubr.f32.gmra.mxu1 %v964_v41  ;;  %v922_v41 = vpop.f32.mrf.mxu1 }
 0x122   : > { %2504 = vmatprep.mubr.f32.mxu1 %v965_v42  ;;  %v988_v42 = vmax.f32 %v898_v34, 0.0  ;;  %v923_v44 = vadd.f32 %v3066_v18, %v922_v41 }
 0x125   : > { %2505 = vmatmul.mubr.f32.gmra.mxu1 %v966_v45  ;;  %v993_v45 = vmax.f32 %v923_v44, 0.0 }
 0x126   : > { %2507 = vmatprep.mubr.f32.mxu1 %v967_v52  ;;  %v990_v52 = vmax.f32 %v908_v39, 0.0 }
 0x129   : > { %2508 = vmatmul.mubr.f32.gmra.mxu1 %v968_v51 }
 0x12a   : > { %2510 = vmatprep.mubr.f32.mxu1 %v969_v50  ;;  %v994_v50 = vmax.f32 %v928_v47, 0.0 }
 0x12d   : > { %2511 = vmatmul.mubr.f32.gmra.mxu1 %v970_v55 }
 0x12e   : > { %2513 = vmatprep.mubr.f32.mxu1 %v971_v58 }
 0x131   : > { %2514 = vmatmul.mubr.f32.gmra.mxu1 %v972_v60 }
 0x132   : > { %2516 = vmatprep.mubr.f32.mxu1 %v973_v59 }
 0x135   : > { %2517 = vmatmul.mubr.f32.gmra.mxu1 %v974_v1 }
 0x136   : > { %2519 = vmatprep.mubr.f32.mxu1 %v975_v0 }
 0x139   : > { %2520 = vmatmul.mubr.f32.gmra.mxu1 %v976_v6 }
 0x13a   : > { %2522 = vmatprep.mubr.f32.mxu1 %v977_v5 }
 0x13d   : > { %2523 = vmatmul.mubr.f32.gmra.mxu1 %v978_v11 }
 0x13e   : > { %2525 = vmatprep.mubr.f32.mxu1 %v979_v9 }
 0x141   : > { %2526 = vmatmul.mubr.f32.gmra.mxu1 %v980_v16 }
 0x142   : > { %2528 = vmatprep.mubr.f32.mxu1 %v981_v13 }
 0x145   : > { %2529 = vmatmul.mubr.f32.gmra.mxu1 %v982_v22 }
 0x146   : > { %2531 = vmatprep.mubr.f32.mxu1 %v983_v19 }
 0x149   : > { %2532 = vmatmul.mubr.f32.gmra.mxu1 %v984_v27 }
 0x14a   : > { %2534 = vmatprep.mubr.f32.mxu1 %v985_v25 }
 0x14d   : > { %2535 = vmatmul.mubr.f32.gmra.mxu1 %v986_v33 }
 0x14e   : > { %2537 = vmatprep.mubr.f32.mxu1 %v987_v30 }
 0x151   : > { %2538 = vmatmul.mubr.f32.gmra.mxu1 %v988_v42 }
 0x152   : > { %2540 = vmatprep.mubr.f32.mxu1 %v989_v36 }
 0x155   : > { %2541 = vmatmul.mubr.f32.gmra.mxu1 %v990_v52 }
 0x156   : > { %2543 = vmatprep.mubr.f32.mxu1 %v991_v43 }
 0x159   : > { %2544 = vmatmul.mubr.f32.gmra.mxu1 %v992_v46 }
 0x15a   : > { %2546 = vmatprep.mubr.f32.mxu1 %v993_v45 }
 0x15d   : > { %2547 = vmatmul.mubr.f32.gmra.mxu1 %v994_v50 }
 0x1a1   : > { %v2455_v48 = vpop.f32.mrf.mxu1 }
 0x1a2   : > { %v1090_v51 = vadd.f32 %v2455_v48, %v3237_v62 }
 0x1a3   : > { %v1084_v53 = vpop.f32.mrf.mxu1 }
 0x1a4   : > { %v1085_v8 = vadd.f32 %v3237_v62, %v1084_v53  ;;  %v1404_v55 = vmax.f32 %v1090_v51, 0.0 }
 0x1a5   : > { %v2458_v58 = vpop.f32.mrf.mxu1 }
 0x1a6   : > { %v1403_v54 = vmax.f32 %v1085_v8, 0.0  ;;  %v1100_v18 = vadd.f32 %v2458_v58, %v3237_v62 }
 0x1a7   : > { %v1094_v24 = vpop.f32.mrf.mxu1 }
 0x1a8   : > { %v1095_v56 = vadd.f32 %v3237_v62, %v1094_v24  ;;  %2581 = vmatprep.mubr.f32.mxu0 %v1403_v54  ;;  %v1406_v60 = vmax.f32 %v1100_v18, 0.0 }
 0x1a9   : > { %v2461_v59 = vpop.f32.mrf.mxu1  ;;  %2582 = vmatmul.mubr.f32.vlgmr.msra.gmra.mxu0 %v1404_v55 }
 0x1aa   : > { %v1405_v4 = vmax.f32 %v1095_v56, 0.0  ;;  %v1110_v61 = vadd.f32 %v2461_v59, %v3237_v62 }
 0x1ab   : > { %v1104_v63 = vpop.f32.mrf.mxu1 }
 0x1ac   : > { %v1105_v0 = vadd.f32 %v3237_v62, %v1104_v63  ;;  %2584 = vmatprep.mubr.f32.mxu0 %v1405_v4  ;;  %v1408_v14 = vmax.f32 %v1110_v61, 0.0 }
 0x1ad   : > { %v2464_v40 = vpop.f32.mrf.mxu1  ;;  %2585 = vmatmul.mubr.f32.gmra.mxu0 %v1406_v60 }
 0x1ae   : > { %v1407_v1 = vmax.f32 %v1105_v0, 0.0  ;;  %v1120_v3 = vadd.f32 %v2464_v40, %v3237_v62 }
 0x1af   : > { %v1114_v5 = vpop.f32.mrf.mxu1 }
 0x1b0   : > { %v1115_v57 = vadd.f32 %v3237_v62, %v1114_v5  ;;  %2587 = vmatprep.mubr.f32.mxu0 %v1407_v1  ;;  %v1410_v7 = vmax.f32 %v1120_v3, 0.0 }
 0x1b1   : > { %v2467_v6 = vpop.f32.mrf.mxu1  ;;  %2588 = vmatmul.mubr.f32.gmra.mxu0 %v1408_v14 }
 0x1b2   : > { %v1409_v32 = vmax.f32 %v1115_v57, 0.0  ;;  %v1130_v9 = vadd.f32 %v2467_v6, %v3237_v62 }
 0x1b3   : > { %v1124_v10 = vpop.f32.mrf.mxu1 }
 0x1b4   : > { %v1125_v11 = vadd.f32 %v3237_v62, %v1124_v10  ;;  %2590 = vmatprep.mubr.f32.mxu0 %v1409_v32  ;;  %v1412_v13 = vmax.f32 %v1130_v9, 0.0 }
 0x1b5   : > { %v2470_v49 = vpop.f32.mrf.mxu1  ;;  %2591 = vmatmul.mubr.f32.gmra.mxu0 %v1410_v7 }
 0x1b6   : > { %v1411_v12 = vmax.f32 %v1125_v11, 0.0  ;;  %v1140_v15 = vadd.f32 %v2470_v49, %v3237_v62 }
 0x1b7   : > { %v1134_v16 = vpop.f32.mrf.mxu1 }
 0x1b8   : > { %v1135_v2 = vadd.f32 %v3237_v62, %v1134_v16  ;;  %2593 = vmatprep.mubr.f32.mxu0 %v1411_v12  ;;  %v1414_v21 = vmax.f32 %v1140_v15, 0.0 }
 0x1b9   : > { %v2473_v17 = vpop.f32.mrf.mxu1  ;;  %2594 = vmatmul.mubr.f32.gmra.mxu0 %v1412_v13 }
 0x1ba   : > { %v1413_v19 = vmax.f32 %v1135_v2, 0.0  ;;  %v1150_v22 = vadd.f32 %v2473_v17, %v3237_v62 }
 0x1bb   : > { %v1144_v23 = vpop.f32.mrf.mxu1 }
 0x1bc   : > { %v1145_v20 = vadd.f32 %v3237_v62, %v1144_v23  ;;  %2596 = vmatprep.mubr.f32.mxu0 %v1413_v19  ;;  %v1416_v27 = vmax.f32 %v1150_v22, 0.0 }
 0x1bd   : > { %v2476_v25 = vpop.f32.mrf.mxu1  ;;  %2597 = vmatmul.mubr.f32.gmra.mxu0 %v1414_v21 }
 0x1be   : > { %v1415_v26 = vmax.f32 %v1145_v20, 0.0  ;;  %v1160_v28 = vadd.f32 %v2476_v25, %v3237_v62 }
 0x1bf   : > { %v1154_v29 = vpop.f32.mrf.mxu1 }
 0x1c0   : > { %v1155_v30 = vadd.f32 %v3237_v62, %v1154_v29  ;;  %2599 = vmatprep.mubr.f32.mxu0 %v1415_v26  ;;  %v1418_v34 = vmax.f32 %v1160_v28, 0.0 }
 0x1c1   : > { %v2479_v31 = vpop.f32.mrf.mxu1  ;;  %2600 = vmatmul.mubr.f32.gmra.mxu0 %v1416_v27 }
 0x1c2   : > { %v1417_v33 = vmax.f32 %v1155_v30, 0.0  ;;  %v1170_v35 = vadd.f32 %v2479_v31, %v3237_v62 }
 0x1c3   : > { %v1164_v36 = vpop.f32.mrf.mxu1 }
 0x1c4   : > { %v1165_v37 = vadd.f32 %v3237_v62, %v1164_v36  ;;  %2602 = vmatprep.mubr.f32.mxu0 %v1417_v33  ;;  %v1420_v41 = vmax.f32 %v1170_v35, 0.0 }
 0x1c5   : > { %v2482_v42 = vpop.f32.mrf.mxu1  ;;  %2603 = vmatmul.mubr.f32.gmra.mxu0 %v1418_v34 }
 0x1c6   : > { %v1419_v39 = vmax.f32 %v1165_v37, 0.0  ;;  %v1180_v43 = vadd.f32 %v2482_v42, %v3237_v62 }
 0x1c7   : > { %v1174_v44 = vpop.f32.mrf.mxu1 }
 0x1c8   : > { %v1175_v52 = vadd.f32 %v3237_v62, %v1174_v44  ;;  %2605 = vmatprep.mubr.f32.mxu0 %v1419_v39  ;;  %v1422_v46 = vmax.f32 %v1180_v43, 0.0 }
 0x1c9   : > { %v2485_v38 = vpop.f32.mrf.mxu1  ;;  %2606 = vmatmul.mubr.f32.gmra.mxu0 %v1420_v41 }
 0x1ca   : > { %v1421_v45 = vmax.f32 %v1175_v52, 0.0  ;;  %v1190_v47 = vadd.f32 %v2485_v38, %v3237_v62 }
 0x1cb   : > { %v1184_v50 = vpop.f32.mrf.mxu1 }
 0x1cc   : > { %v1185_v48 = vadd.f32 %v3237_v62, %v1184_v50  ;;  %2608 = vmatprep.mubr.f32.mxu0 %v1421_v45  ;;  %v1424_v8 = vmax.f32 %v1190_v47, 0.0 }
 0x1cd   : > { %v2488_v51 = vpop.f32.mrf.mxu1  ;;  %2609 = vmatmul.mubr.f32.gmra.mxu0 %v1422_v46 }
 0x1ce   : > { %v1423_v53 = vmax.f32 %v1185_v48, 0.0  ;;  %v1200_v58 = vadd.f32 %v2488_v51, %v3237_v62 }
 0x1cf   : > { %v1194_v54 = vpop.f32.mrf.mxu1 }
 0x1d0   : > { %v1195_v55 = vadd.f32 %v3237_v62, %v1194_v54  ;;  %2611 = vmatprep.mubr.f32.mxu0 %v1423_v53  ;;  %v1426_v56 = vmax.f32 %v1200_v58, 0.0 }
 0x1d1   : > { %v2491_v18 = vpop.f32.mrf.mxu1  ;;  %2612 = vmatmul.mubr.f32.gmra.mxu0 %v1424_v8 }
 0x1d2   : > { %v1425_v24 = vmax.f32 %v1195_v55, 0.0  ;;  %v1210_v59 = vadd.f32 %v2491_v18, %v3237_v62 }
 0x1d3   : > { %v1204_v4 = vpop.f32.mrf.mxu1 }
 0x1d4   : > { %v1205_v60 = vadd.f32 %v3237_v62, %v1204_v4  ;;  %2614 = vmatprep.mubr.f32.mxu0 %v1425_v24  ;;  %v1428_v0 = vmax.f32 %v1210_v59, 0.0 }
 0x1d5   : > { %v2494_v61 = vpop.f32.mrf.mxu1  ;;  %2615 = vmatmul.mubr.f32.gmra.mxu0 %v1426_v56 }
 0x1d6   : > { %v1427_v63 = vmax.f32 %v1205_v60, 0.0  ;;  %v1220_v40 = vadd.f32 %v2494_v61, %v3237_v62 }
 0x1d7   : > { %v1214_v1 = vpop.f32.mrf.mxu1 }
 0x1d8   : > { %v1215_v14 = vadd.f32 %v3237_v62, %v1214_v1  ;;  %2617 = vmatprep.mubr.f32.mxu0 %v1427_v63  ;;  %v1430_v57 = vmax.f32 %v1220_v40, 0.0 }
 0x1d9   : > { %v2497_v3 = vpop.f32.mrf.mxu1  ;;  %2618 = vmatmul.mubr.f32.gmra.mxu0 %v1428_v0 }
 0x1da   : > { %v1429_v5 = vmax.f32 %v1215_v14, 0.0  ;;  %v1230_v6 = vadd.f32 %v2497_v3, %v3237_v62 }
 0x1db   : > { %v1224_v32 = vpop.f32.mrf.mxu1 }
 0x1dc   : > { %v1225_v7 = vadd.f32 %v3237_v62, %v1224_v32  ;;  %2620 = vmatprep.mubr.f32.mxu0 %v1429_v5  ;;  %v1432_v11 = vmax.f32 %v1230_v6, 0.0 }
 0x1dd   : > { %v2500_v9 = vpop.f32.mrf.mxu1  ;;  %2621 = vmatmul.mubr.f32.gmra.mxu0 %v1430_v57 }
 0x1de   : > { %v1431_v10 = vmax.f32 %v1225_v7, 0.0  ;;  %v1240_v49 = vadd.f32 %v2500_v9, %v3237_v62 }
 0x1df   : > { %v1234_v12 = vpop.f32.mrf.mxu1 }
 0x1e0   : > { %v1235_v13 = vadd.f32 %v3237_v62, %v1234_v12  ;;  %2623 = vmatprep.mubr.f32.mxu0 %v1431_v10  ;;  %v1434_v2 = vmax.f32 %v1240_v49, 0.0 }
 0x1e1   : > { %v2503_v15 = vpop.f32.mrf.mxu1  ;;  %2624 = vmatmul.mubr.f32.gmra.mxu0 %v1432_v11 }
 0x1e2   : > { %v1433_v16 = vmax.f32 %v1235_v13, 0.0  ;;  %v1250_v17 = vadd.f32 %v2503_v15, %v3237_v62 }
 0x1e3   : > { %v1244_v19 = vpop.f32.mrf.mxu1 }
 0x1e4   : > { %v1245_v21 = vadd.f32 %v3237_v62, %v1244_v19  ;;  %2626 = vmatprep.mubr.f32.mxu0 %v1433_v16  ;;  %v1436_v20 = vmax.f32 %v1250_v17, 0.0 }
 0x1e5   : > { %v2506_v22 = vpop.f32.mrf.mxu1  ;;  %2627 = vmatmul.mubr.f32.gmra.mxu0 %v1434_v2 }
 0x1e6   : > { %v1435_v23 = vmax.f32 %v1245_v21, 0.0  ;;  %v1260_v25 = vadd.f32 %v2506_v22, %v3237_v62 }
 0x1e7   : > { %v1254_v26 = vpop.f32.mrf.mxu1 }
 0x1e8   : > { %v1255_v27 = vadd.f32 %v3237_v62, %v1254_v26  ;;  %2629 = vmatprep.mubr.f32.mxu0 %v1435_v23  ;;  %v1438_v30 = vmax.f32 %v1260_v25, 0.0 }
 0x1e9   : > { %v2509_v28 = vpop.f32.mrf.mxu1  ;;  %2630 = vmatmul.mubr.f32.gmra.mxu0 %v1436_v20 }
 0x1ea   : > { %v1437_v29 = vmax.f32 %v1255_v27, 0.0  ;;  %v1270_v31 = vadd.f32 %v2509_v28, %v3237_v62 }
 0x1eb   : > { %v1264_v33 = vpop.f32.mrf.mxu1 }
 0x1ec   : > { %v1265_v34 = vadd.f32 %v3237_v62, %v1264_v33  ;;  %2632 = vmatprep.mubr.f32.mxu0 %v1437_v29  ;;  %v1440_v37 = vmax.f32 %v1270_v31, 0.0 }
 0x1ed   : > { %v2512_v35 = vpop.f32.mrf.mxu1  ;;  %2633 = vmatmul.mubr.f32.gmra.mxu0 %v1438_v30 }
 0x1ee   : > { %v1439_v36 = vmax.f32 %v1265_v34, 0.0  ;;  %v1280_v42 = vadd.f32 %v2512_v35, %v3237_v62 }
 0x1ef   : > { %v1274_v39 = vpop.f32.mrf.mxu1 }
 0x1f0   : > { %v1275_v41 = vadd.f32 %v3237_v62, %v1274_v39  ;;  %2635 = vmatprep.mubr.f32.mxu0 %v1439_v36  ;;  %v1442_v52 = vmax.f32 %v1280_v42, 0.0 }
 0x1f1   : > { %v2515_v43 = vpop.f32.mrf.mxu1  ;;  %2636 = vmatmul.mubr.f32.gmra.mxu0 %v1440_v37 }
 0x1f2   : > { %v1441_v44 = vmax.f32 %v1275_v41, 0.0  ;;  %v1290_v38 = vadd.f32 %v2515_v43, %v3237_v62 }
 0x1f3   : > { %v1284_v45 = vpop.f32.mrf.mxu1 }
 0x1f4   : > { %v1285_v46 = vadd.f32 %v3237_v62, %v1284_v45  ;;  %2638 = vmatprep.mubr.f32.mxu0 %v1441_v44  ;;  %v1444_v48 = vmax.f32 %v1290_v38, 0.0 }
 0x1f5   : > { %v2518_v47 = vpop.f32.mrf.mxu1  ;;  %2639 = vmatmul.mubr.f32.gmra.mxu0 %v1442_v52 }
 0x1f6   : > { %v1443_v50 = vmax.f32 %v1285_v46, 0.0  ;;  %v1300_v51 = vadd.f32 %v2518_v47, %v3237_v62 }
 0x1f7   : > { %v1294_v53 = vpop.f32.mrf.mxu1 }
 0x1f8   : > { %v1295_v8 = vadd.f32 %v3237_v62, %v1294_v53  ;;  %2641 = vmatprep.mubr.f32.mxu0 %v1443_v50  ;;  %v1446_v55 = vmax.f32 %v1300_v51, 0.0 }
 0x1f9   : > { %v2521_v58 = vpop.f32.mrf.mxu1  ;;  %2642 = vmatmul.mubr.f32.gmra.mxu0 %v1444_v48 }
 0x1fa   : > { %v1445_v54 = vmax.f32 %v1295_v8, 0.0  ;;  %v1310_v18 = vadd.f32 %v2521_v58, %v3237_v62  ;;  %v3309_v8 = vld [vmem:[%s3498_s6] ss:$0 sm:$0xff] }
 0x1fb   : > { %v1304_v24 = vpop.f32.mrf.mxu1 }
 0x1fc   : > { %v1305_v56 = vadd.f32 %v3237_v62, %v1304_v24  ;;  %2644 = vmatprep.mubr.f32.mxu0 %v1445_v54  ;;  %v1448_v60 = vmax.f32 %v1310_v18, 0.0 }
 0x1fd   : > { %v2524_v59 = vpop.f32.mrf.mxu1  ;;  %2645 = vmatmul.mubr.f32.gmra.mxu0 %v1446_v55 }
 0x1fe   : > { %v1447_v4 = vmax.f32 %v1305_v56, 0.0  ;;  %v1320_v61 = vadd.f32 %v2524_v59, %v3237_v62 }
 0x1ff   : > { %v1314_v63 = vpop.f32.mrf.mxu1 }
 0x200   : > { %v1315_v0 = vadd.f32 %v3237_v62, %v1314_v63  ;;  %2647 = vmatprep.mubr.f32.mxu0 %v1447_v4  ;;  %v1450_v14 = vmax.f32 %v1320_v61, 0.0 }
 0x201   : > { %v2527_v40 = vpop.f32.mrf.mxu1  ;;  %2648 = vmatmul.mubr.f32.gmra.mxu0 %v1448_v60 }
 0x202   : > { %v1449_v1 = vmax.f32 %v1315_v0, 0.0  ;;  %v1330_v3 = vadd.f32 %v2527_v40, %v3237_v62 }
 0x203   : > { %v1324_v5 = vpop.f32.mrf.mxu1 }
 0x204   : > { %v1325_v57 = vadd.f32 %v3237_v62, %v1324_v5  ;;  %2650 = vmatprep.mubr.f32.mxu0 %v1449_v1  ;;  %v1452_v7 = vmax.f32 %v1330_v3, 0.0 }
 0x205   : > { %v2530_v6 = vpop.f32.mrf.mxu1  ;;  %2651 = vmatmul.mubr.f32.gmra.mxu0 %v1450_v14 }
 0x206   : > { %v1451_v32 = vmax.f32 %v1325_v57, 0.0  ;;  %v1340_v9 = vadd.f32 %v2530_v6, %v3237_v62 }
 0x207   : > { %v1334_v10 = vpop.f32.mrf.mxu1 }
 0x208   : > { %v1335_v11 = vadd.f32 %v3237_v62, %v1334_v10  ;;  %2653 = vmatprep.mubr.f32.mxu0 %v1451_v32  ;;  %v1454_v13 = vmax.f32 %v1340_v9, 0.0 }
 0x209   : > { %v2533_v49 = vpop.f32.mrf.mxu1  ;;  %2654 = vmatmul.mubr.f32.gmra.mxu0 %v1452_v7 }
 0x20a   : > { %v1453_v12 = vmax.f32 %v1335_v11, 0.0  ;;  %v1350_v15 = vadd.f32 %v2533_v49, %v3237_v62 }
 0x20b   : > { %v1344_v16 = vpop.f32.mrf.mxu1 }
 0x20c   : > { %v1345_v2 = vadd.f32 %v3237_v62, %v1344_v16  ;;  %2656 = vmatprep.mubr.f32.mxu0 %v1453_v12  ;;  %v1456_v21 = vmax.f32 %v1350_v15, 0.0 }
 0x20d   : > { %v2536_v17 = vpop.f32.mrf.mxu1  ;;  %2657 = vmatmul.mubr.f32.gmra.mxu0 %v1454_v13 }
 0x20e   : > { %v1455_v19 = vmax.f32 %v1345_v2, 0.0  ;;  %v1360_v22 = vadd.f32 %v2536_v17, %v3237_v62 }
 0x20f   : > { %v1354_v23 = vpop.f32.mrf.mxu1 }
 0x210   : > { %v1355_v20 = vadd.f32 %v3237_v62, %v1354_v23  ;;  %2659 = vmatprep.mubr.f32.mxu0 %v1455_v19  ;;  %v1458_v27 = vmax.f32 %v1360_v22, 0.0 }
 0x211   : > { %v2539_v25 = vpop.f32.mrf.mxu1  ;;  %2660 = vmatmul.mubr.f32.gmra.mxu0 %v1456_v21 }
 0x212   : > { %v1457_v26 = vmax.f32 %v1355_v20, 0.0  ;;  %v1370_v28 = vadd.f32 %v2539_v25, %v3237_v62 }
 0x213   : > { %v1364_v29 = vpop.f32.mrf.mxu1 }
 0x214   : > { %v1365_v30 = vadd.f32 %v3237_v62, %v1364_v29  ;;  %2662 = vmatprep.mubr.f32.mxu0 %v1457_v26  ;;  %v1460_v34 = vmax.f32 %v1370_v28, 0.0 }
 0x215   : > { %v2542_v31 = vpop.f32.mrf.mxu1  ;;  %2663 = vmatmul.mubr.f32.gmra.mxu0 %v1458_v27 }
 0x216   : > { %v1459_v33 = vmax.f32 %v1365_v30, 0.0  ;;  %v1380_v35 = vadd.f32 %v2542_v31, %v3237_v62 }
 0x217   : > { %v1374_v36 = vpop.f32.mrf.mxu1 }
 0x218   : > { %v1375_v37 = vadd.f32 %v3237_v62, %v1374_v36  ;;  %2665 = vmatprep.mubr.f32.mxu0 %v1459_v33  ;;  %v1462_v41 = vmax.f32 %v1380_v35, 0.0 }
 0x219   : > { %v2545_v42 = vpop.f32.mrf.mxu1  ;;  %2666 = vmatmul.mubr.f32.gmra.mxu0 %v1460_v34 }
 0x21a   : > { %v1461_v39 = vmax.f32 %v1375_v37, 0.0  ;;  %v1390_v43 = vadd.f32 %v2545_v42, %v3237_v62 }
 0x21b   : > { %v1384_v44 = vpop.f32.mrf.mxu1 }
 0x21c   : > { %v1385_v52 = vadd.f32 %v3237_v62, %v1384_v44  ;;  %2668 = vmatprep.mubr.f32.mxu0 %v1461_v39  ;;  %v1464_v46 = vmax.f32 %v1390_v43, 0.0 }
 0x21d   : > { %v2548_v38 = vpop.f32.mrf.mxu1  ;;  %2669 = vmatmul.mubr.f32.gmra.mxu0 %v1462_v41 }
 0x21e   : > { %v1463_v45 = vmax.f32 %v1385_v52, 0.0  ;;  %v1400_v47 = vadd.f32 %v2548_v38, %v3237_v62 }
 0x21f   : > { %v1394_v50 = vpop.f32.mrf.mxu1 }
 0x220   : > { %v1395_v48 = vadd.f32 %v3237_v62, %v1394_v50  ;;  %2671 = vmatprep.mubr.f32.mxu0 %v1463_v45  ;;  %v1466_v53 = vmax.f32 %v1400_v47, 0.0 }
 0x221   : > { %2672 = vmatmul.mubr.f32.gmra.mxu0 %v1464_v46 }
 0x222   : > { %v1465_v51 = vmax.f32 %v1395_v48, 0.0 }
 0x224   : > { %2674 = vmatprep.mubr.f32.mxu0 %v1465_v51 }
 0x225   : > { %2675 = vmatmul.mubr.f32.gmra.mxu0 %v1466_v53 }
 0x269   : > { %v2583_v58 = vpop.f32.mrf.mxu0 }
 0x26a   : > { %v1562_v54 = vadd.f32 %v2583_v58, %v3309_v8 }
 0x26b   : > { %v1556_v55 = vpop.f32.mrf.mxu0 }
 0x26c   : > { %1876 = vst [vmem:[%s3312_s9 + $0x8] sm:$0xff] %v1562_v54  ;;  %v1557_v62 = vadd.f32 %v3309_v8, %v1556_v55 }
 0x26d   : > { %v2586_v18 = vpop.f32.mrf.mxu0 }
 0x26e   : > { %1875 = vst [vmem:[%s3312_s9] sm:$0xff] %v1557_v62  ;;  %v1572_v24 = vadd.f32 %v2586_v18, %v3309_v8 }
 0x26f   : > { %v1566_v56 = vpop.f32.mrf.mxu0 }
 0x270   : > { %1878 = vst [vmem:[%s3312_s9 + $0x18] sm:$0xff] %v1572_v24  ;;  %v1567_v59 = vadd.f32 %v3309_v8, %v1566_v56 }
 0x271   : > { %v2589_v4 = vpop.f32.mrf.mxu0 }
 0x272   : > { %1877 = vst [vmem:[%s3312_s9 + $0x10] sm:$0xff] %v1567_v59  ;;  %v1582_v60 = vadd.f32 %v2589_v4, %v3309_v8 }
 0x273   : > { %v1576_v61 = vpop.f32.mrf.mxu0 }
 0x274   : > { %1880 = vst [vmem:[%s3312_s9 + $0x28] sm:$0xff] %v1582_v60  ;;  %v1577_v63 = vadd.f32 %v3309_v8, %v1576_v61 }
 0x275   : > { %v2592_v0 = vpop.f32.mrf.mxu0 }
 0x276   : > { %1879 = vst [vmem:[%s3312_s9 + $0x20] sm:$0xff] %v1577_v63  ;;  %v1592_v40 = vadd.f32 %v2592_v0, %v3309_v8 }
 0x277   : > { %v1586_v1 = vpop.f32.mrf.mxu0 }
 0x278   : > { %1882 = vst [vmem:[%s3312_s9 + $0x38] sm:$0xff] %v1592_v40  ;;  %v1587_v14 = vadd.f32 %v3309_v8, %v1586_v1 }
 0x279   : > { %v2595_v3 = vpop.f32.mrf.mxu0 }
 0x27a   : > { %1881 = vst [vmem:[%s3312_s9 + $0x30] sm:$0xff] %v1587_v14  ;;  %v1602_v5 = vadd.f32 %v2595_v3, %v3309_v8 }
 0x27b   : > { %v1596_v57 = vpop.f32.mrf.mxu0 }
 0x27c   : > { %1884 = vst [vmem:[%s3312_s9 + $0x48] sm:$0xff] %v1602_v5  ;;  %v1597_v6 = vadd.f32 %v3309_v8, %v1596_v57 }
 0x27d   : > { %v2598_v32 = vpop.f32.mrf.mxu0 }
 0x27e   : > { %1883 = vst [vmem:[%s3312_s9 + $0x40] sm:$0xff] %v1597_v6  ;;  %v1612_v7 = vadd.f32 %v2598_v32, %v3309_v8 }
 0x27f   : > { %v1606_v9 = vpop.f32.mrf.mxu0 }
 0x280   : > { %1886 = vst [vmem:[%s3312_s9 + $0x58] sm:$0xff] %v1612_v7  ;;  %v1607_v10 = vadd.f32 %v3309_v8, %v1606_v9 }
 0x281   : > { %v2601_v11 = vpop.f32.mrf.mxu0 }
 0x282   : > { %1885 = vst [vmem:[%s3312_s9 + $0x50] sm:$0xff] %v1607_v10  ;;  %v1622_v49 = vadd.f32 %v2601_v11, %v3309_v8 }
 0x283   : > { %v1616_v12 = vpop.f32.mrf.mxu0 }
 0x284   : > { %1888 = vst [vmem:[%s3312_s9 + $0x68] sm:$0xff] %v1622_v49  ;;  %v1617_v13 = vadd.f32 %v3309_v8, %v1616_v12 }
 0x285   : > { %v2604_v15 = vpop.f32.mrf.mxu0 }
 0x286   : > { %1887 = vst [vmem:[%s3312_s9 + $0x60] sm:$0xff] %v1617_v13  ;;  %v1632_v16 = vadd.f32 %v2604_v15, %v3309_v8 }
 0x287   : > { %v1626_v2 = vpop.f32.mrf.mxu0 }
 0x288   : > { %1890 = vst [vmem:[%s3312_s9 + $0x78] sm:$0xff] %v1632_v16  ;;  %v1627_v17 = vadd.f32 %v3309_v8, %v1626_v2 }
 0x289   : > { %v2607_v19 = vpop.f32.mrf.mxu0 }
 0x28a   : > { %1889 = vst [vmem:[%s3312_s9 + $0x70] sm:$0xff] %v1627_v17  ;;  %v1642_v21 = vadd.f32 %v2607_v19, %v3309_v8 }
 0x28b   : > { %v1636_v22 = vpop.f32.mrf.mxu0 }
 0x28c   : > { %1892 = vst [vmem:[%s3312_s9 + $0x88] sm:$0xff] %v1642_v21  ;;  %v1637_v23 = vadd.f32 %v3309_v8, %v1636_v22 }
 0x28d   : > { %v2610_v20 = vpop.f32.mrf.mxu0 }
 0x28e   : > { %1891 = vst [vmem:[%s3312_s9 + $0x80] sm:$0xff] %v1637_v23  ;;  %v1652_v25 = vadd.f32 %v2610_v20, %v3309_v8 }
 0x28f   : > { %v1646_v26 = vpop.f32.mrf.mxu0 }
 0x290   : > { %1894 = vst [vmem:[%s3312_s9 + $0x98] sm:$0xff] %v1652_v25  ;;  %v1647_v27 = vadd.f32 %v3309_v8, %v1646_v26 }
 0x291   : > { %v2613_v28 = vpop.f32.mrf.mxu0 }
 0x292   : > { %1893 = vst [vmem:[%s3312_s9 + $0x90] sm:$0xff] %v1647_v27  ;;  %v1662_v29 = vadd.f32 %v2613_v28, %v3309_v8 }
 0x293   : > { %v1656_v30 = vpop.f32.mrf.mxu0 }
 0x294   : > { %1896 = vst [vmem:[%s3312_s9 + $0xa8] sm:$0xff] %v1662_v29  ;;  %v1657_v31 = vadd.f32 %v3309_v8, %v1656_v30 }
 0x295   : > { %v2616_v33 = vpop.f32.mrf.mxu0 }
 0x296   : > { %1895 = vst [vmem:[%s3312_s9 + $0xa0] sm:$0xff] %v1657_v31  ;;  %v1672_v34 = vadd.f32 %v2616_v33, %v3309_v8 }
 0x297   : > { %v1666_v35 = vpop.f32.mrf.mxu0 }
 0x298   : > { %1898 = vst [vmem:[%s3312_s9 + $0xb8] sm:$0xff] %v1672_v34  ;;  %v1667_v36 = vadd.f32 %v3309_v8, %v1666_v35 }
 0x299   : > { %v2619_v37 = vpop.f32.mrf.mxu0 }
 0x29a   : > { %1897 = vst [vmem:[%s3312_s9 + $0xb0] sm:$0xff] %v1667_v36  ;;  %v1682_v42 = vadd.f32 %v2619_v37, %v3309_v8 }
 0x29b   : > { %v1676_v39 = vpop.f32.mrf.mxu0 }
 0x29c   : > { %1900 = vst [vmem:[%s3312_s9 + $0xc8] sm:$0xff] %v1682_v42  ;;  %v1677_v41 = vadd.f32 %v3309_v8, %v1676_v39 }
 0x29d   : > { %v2622_v43 = vpop.f32.mrf.mxu0 }
 0x29e   : > { %1899 = vst [vmem:[%s3312_s9 + $0xc0] sm:$0xff] %v1677_v41  ;;  %v1692_v44 = vadd.f32 %v2622_v43, %v3309_v8 }
 0x29f   : > { %v1686_v52 = vpop.f32.mrf.mxu0 }
 0x2a0   : > { %1902 = vst [vmem:[%s3312_s9 + $0xd8] sm:$0xff] %v1692_v44  ;;  %v1687_v38 = vadd.f32 %v3309_v8, %v1686_v52 }
 0x2a1   : > { %v2625_v45 = vpop.f32.mrf.mxu0 }
 0x2a2   : > { %1901 = vst [vmem:[%s3312_s9 + $0xd0] sm:$0xff] %v1687_v38  ;;  %v1702_v46 = vadd.f32 %v2625_v45, %v3309_v8 }
 0x2a3   : > { %v1696_v47 = vpop.f32.mrf.mxu0 }
 0x2a4   : > { %1904 = vst [vmem:[%s3312_s9 + $0xe8] sm:$0xff] %v1702_v46  ;;  %v1697_v50 = vadd.f32 %v3309_v8, %v1696_v47 }
 0x2a5   : > { %v2628_v48 = vpop.f32.mrf.mxu0 }
 0x2a6   : > { %1903 = vst [vmem:[%s3312_s9 + $0xe0] sm:$0xff] %v1697_v50  ;;  %v1712_v51 = vadd.f32 %v2628_v48, %v3309_v8 }
 0x2a7   : > { %v1706_v53 = vpop.f32.mrf.mxu0 }
 0x2a8   : > { %1906 = vst [vmem:[%s3312_s9 + $0xf8] sm:$0xff] %v1712_v51  ;;  %v1707_v58 = vadd.f32 %v3309_v8, %v1706_v53 }
 0x2a9   : > { %v2631_v54 = vpop.f32.mrf.mxu0 }
 0x2aa   : > { %1905 = vst [vmem:[%s3312_s9 + $0xf0] sm:$0xff] %v1707_v58  ;;  %v1722_v55 = vadd.f32 %v2631_v54, %v3309_v8 }
 0x2ab   : > { %v1716_v62 = vpop.f32.mrf.mxu0 }
 0x2ac   : > { %1908 = vst [vmem:[%s3312_s9 + $0x108] sm:$0xff] %v1722_v55  ;;  %v1717_v18 = vadd.f32 %v3309_v8, %v1716_v62 }
 0x2ad   : > { %v2634_v24 = vpop.f32.mrf.mxu0 }
 0x2ae   : > { %1907 = vst [vmem:[%s3312_s9 + $0x100] sm:$0xff] %v1717_v18  ;;  %v1732_v56 = vadd.f32 %v2634_v24, %v3309_v8 }
 0x2af   : > { %v1726_v59 = vpop.f32.mrf.mxu0 }
 0x2b0   : > { %1910 = vst [vmem:[%s3312_s9 + $0x118] sm:$0xff] %v1732_v56  ;;  %v1727_v4 = vadd.f32 %v3309_v8, %v1726_v59 }
 0x2b1   : > { %v2637_v60 = vpop.f32.mrf.mxu0 }
 0x2b2   : > { %1909 = vst [vmem:[%s3312_s9 + $0x110] sm:$0xff] %v1727_v4  ;;  %v1742_v61 = vadd.f32 %v2637_v60, %v3309_v8 }
 0x2b3   : > { %v1736_v63 = vpop.f32.mrf.mxu0 }
 0x2b4   : > { %1912 = vst [vmem:[%s3312_s9 + $0x128] sm:$0xff] %v1742_v61  ;;  %v1737_v0 = vadd.f32 %v3309_v8, %v1736_v63 }
 0x2b5   : > { %v2640_v40 = vpop.f32.mrf.mxu0 }
 0x2b6   : > { %1911 = vst [vmem:[%s3312_s9 + $0x120] sm:$0xff] %v1737_v0  ;;  %v1752_v1 = vadd.f32 %v2640_v40, %v3309_v8 }
 0x2b7   : > { %v1746_v14 = vpop.f32.mrf.mxu0 }
 0x2b8   : > { %1914 = vst [vmem:[%s3312_s9 + $0x138] sm:$0xff] %v1752_v1  ;;  %v1747_v3 = vadd.f32 %v3309_v8, %v1746_v14 }
 0x2b9   : > { %v2643_v5 = vpop.f32.mrf.mxu0 }
 0x2ba   : > { %1913 = vst [vmem:[%s3312_s9 + $0x130] sm:$0xff] %v1747_v3  ;;  %v1762_v57 = vadd.f32 %v2643_v5, %v3309_v8 }
 0x2bb   : > { %v1756_v6 = vpop.f32.mrf.mxu0 }
 0x2bc   : > { %1916 = vst [vmem:[%s3312_s9 + $0x148] sm:$0xff] %v1762_v57  ;;  %v1757_v32 = vadd.f32 %v3309_v8, %v1756_v6 }
 0x2bd   : > { %v2646_v7 = vpop.f32.mrf.mxu0 }
 0x2be   : > { %1915 = vst [vmem:[%s3312_s9 + $0x140] sm:$0xff] %v1757_v32  ;;  %v1772_v9 = vadd.f32 %v2646_v7, %v3309_v8 }
 0x2bf   : > { %v1766_v10 = vpop.f32.mrf.mxu0 }
 0x2c0   : > { %1918 = vst [vmem:[%s3312_s9 + $0x158] sm:$0xff] %v1772_v9  ;;  %v1767_v11 = vadd.f32 %v3309_v8, %v1766_v10 }
 0x2c1   : > { %v2649_v49 = vpop.f32.mrf.mxu0 }
 0x2c2   : > { %1917 = vst [vmem:[%s3312_s9 + $0x150] sm:$0xff] %v1767_v11  ;;  %v1782_v12 = vadd.f32 %v2649_v49, %v3309_v8 }
 0x2c3   : > { %v1776_v13 = vpop.f32.mrf.mxu0 }
 0x2c4   : > { %1920 = vst [vmem:[%s3312_s9 + $0x168] sm:$0xff] %v1782_v12  ;;  %v1777_v15 = vadd.f32 %v3309_v8, %v1776_v13 }
 0x2c5   : > { %v2652_v16 = vpop.f32.mrf.mxu0 }
 0x2c6   : > { %1919 = vst [vmem:[%s3312_s9 + $0x160] sm:$0xff] %v1777_v15  ;;  %v1792_v2 = vadd.f32 %v2652_v16, %v3309_v8 }
 0x2c7   : > { %v1786_v17 = vpop.f32.mrf.mxu0 }
 0x2c8   : > { %1922 = vst [vmem:[%s3312_s9 + $0x178] sm:$0xff] %v1792_v2  ;;  %v1787_v19 = vadd.f32 %v3309_v8, %v1786_v17 }
 0x2c9   : > { %v2655_v21 = vpop.f32.mrf.mxu0 }
 0x2ca   : > { %1921 = vst [vmem:[%s3312_s9 + $0x170] sm:$0xff] %v1787_v19  ;;  %v1802_v22 = vadd.f32 %v2655_v21, %v3309_v8 }
 0x2cb   : > { %v1796_v23 = vpop.f32.mrf.mxu0 }
 0x2cc   : > { %1924 = vst [vmem:[%s3312_s9 + $0x188] sm:$0xff] %v1802_v22  ;;  %v1797_v20 = vadd.f32 %v3309_v8, %v1796_v23 }
 0x2cd   : > { %v2658_v25 = vpop.f32.mrf.mxu0 }
 0x2ce   : > { %1923 = vst [vmem:[%s3312_s9 + $0x180] sm:$0xff] %v1797_v20  ;;  %v1812_v26 = vadd.f32 %v2658_v25, %v3309_v8 }
 0x2cf   : > { %v1806_v27 = vpop.f32.mrf.mxu0 }
 0x2d0   : > { %1926 = vst [vmem:[%s3312_s9 + $0x198] sm:$0xff] %v1812_v26  ;;  %v1807_v28 = vadd.f32 %v3309_v8, %v1806_v27 }
 0x2d1   : > { %v2661_v29 = vpop.f32.mrf.mxu0 }
 0x2d2   : > { %1925 = vst [vmem:[%s3312_s9 + $0x190] sm:$0xff] %v1807_v28  ;;  %v1822_v30 = vadd.f32 %v2661_v29, %v3309_v8 }
 0x2d3   : > { %v1816_v31 = vpop.f32.mrf.mxu0 }
 0x2d4   : > { %1928 = vst [vmem:[%s3312_s9 + $0x1a8] sm:$0xff] %v1822_v30  ;;  %v1817_v33 = vadd.f32 %v3309_v8, %v1816_v31 }
 0x2d5   : > { %v2664_v34 = vpop.f32.mrf.mxu0 }
 0x2d6   : > { %1927 = vst [vmem:[%s3312_s9 + $0x1a0] sm:$0xff] %v1817_v33  ;;  %v1832_v35 = vadd.f32 %v2664_v34, %v3309_v8 }
 0x2d7   : > { %v1826_v36 = vpop.f32.mrf.mxu0 }
 0x2d8   : > { %1930 = vst [vmem:[%s3312_s9 + $0x1b8] sm:$0xff] %v1832_v35  ;;  %v1827_v37 = vadd.f32 %v3309_v8, %v1826_v36 }
 0x2d9   : > { %v2667_v42 = vpop.f32.mrf.mxu0 }
 0x2da   : > { %1929 = vst [vmem:[%s3312_s9 + $0x1b0] sm:$0xff] %v1827_v37  ;;  %v1842_v39 = vadd.f32 %v2667_v42, %v3309_v8 }
 0x2db   : > { %v1836_v41 = vpop.f32.mrf.mxu0 }
 0x2dc   : > { %1932 = vst [vmem:[%s3312_s9 + $0x1c8] sm:$0xff] %v1842_v39  ;;  %v1837_v43 = vadd.f32 %v3309_v8, %v1836_v41 }
 0x2dd   : > { %v2670_v44 = vpop.f32.mrf.mxu0 }
 0x2de   : > { %1931 = vst [vmem:[%s3312_s9 + $0x1c0] sm:$0xff] %v1837_v43  ;;  %v1852_v52 = vadd.f32 %v2670_v44, %v3309_v8 }
 0x2df   : > { %v1846_v38 = vpop.f32.mrf.mxu0 }
 0x2e0   : > { %1934 = vst [vmem:[%s3312_s9 + $0x1d8] sm:$0xff] %v1852_v52  ;;  %v1847_v45 = vadd.f32 %v3309_v8, %v1846_v38 }
 0x2e1   : > { %v2673_v46 = vpop.f32.mrf.mxu0 }
 0x2e2   : > { %1933 = vst [vmem:[%s3312_s9 + $0x1d0] sm:$0xff] %v1847_v45  ;;  %v1862_v47 = vadd.f32 %v2673_v46, %v3309_v8 }
 0x2e3   : > { %v1856_v50 = vpop.f32.mrf.mxu0 }
 0x2e4   : > { %1936 = vst [vmem:[%s3312_s9 + $0x1e8] sm:$0xff] %v1862_v47  ;;  %v1857_v48 = vadd.f32 %v3309_v8, %v1856_v50 }
 0x2e5   : > { %v2676_v51 = vpop.f32.mrf.mxu0 }
 0x2e6   : > { %1935 = vst [vmem:[%s3312_s9 + $0x1e0] sm:$0xff] %v1857_v48  ;;  %v1872_v53 = vadd.f32 %v2676_v51, %v3309_v8 }
 0x2e7   : > { %v1866_v58 = vpop.f32.mrf.mxu0 }
 0x2e8   : > { %1938 = vst [vmem:[%s3312_s9 + $0x1f8] sm:$0xff] %v1872_v53  ;;  %v1867_v54 = vadd.f32 %v3309_v8, %v1866_v58 }
 0x2ea   : > { %1937 = vst [vmem:[%s3312_s9 + $0x1f0] sm:$0xff] %v1867_v54 }
 0x2eb   : > { %2735 = shalt.err (!%p2732_p3)
}
 0x2ec   : > { %s2736_s21 = scalar_lea.hbm %s3443_s16, 8192  ;;  %s2740_s8 = scalar_lea.hbm %s3499_s7, 16384 }
 0x2ed   : > { %p2737_p4 = scmp.ne.s32.totalorder %s3443_s16, %s2736_s21  ;;  %p2741_p9 = scmp.lt.s32.totalorder %s3443_s16, %s3499_s7 }
 0x2ee   : > { %p2742_p10 = scmp.lt.s32.totalorder %s2740_s8, %s2736_s21 }
 0x2ef   : > { %p2738_p7 = pnand %p2737_p4, %p2865_p5 }
 0x2f0   : > { %p2743_p11 = por %p2742_p10, %p2741_p9 }
 0x2f1   : > { %p2739_p8 = pneg %p2738_p7 }
 0x2f3   : > { %p2744_p12 = pnand %p2743_p11, %p2739_p8 }
 0x2f5   : > { %2747 = shalt.err (!%p2744_p12)
}
 0x2f6   : > { %s2785_s15 = smov 128   ;;  %s2786_s23 = smov 8  }
 0x2f7   : > { %2681 = dma.vmem_to_hbm [thread:$0]  (%p2865_p5), %s3445_s14, 8192, %s3443_s16, %s3452_s28, %s2785_s15, %s2785_s15, %s2786_s23  }
 0x2f8 PF: > { %p2687_p13 = scmp.ge.s32.totalorder %s2782_s27, 2  ;;  %s1968_s17 = sand.u32 1, %s2770_s24  }
 0x2f9   : > { %s1969_s18 = scalar_lea.sflag [#allocation3], %s1968_s17 }
 0x2fa   : > { %p2684_p0 = pnand %p2687_p13, %p2869_p6 }
 0x2fc   : > { %p2685_p1 = pneg %p2684_p0 }
 0x2fe   : > { %2765 = dma.done.wait (%p2685_p1), %s1969_s18, 8192  }
 0x2ff   : > { %2767 = vsyncadd (%p2685_p1), %s1969_s18, 4294959104  ;;  %p17_p2 = scmp.ge.s32.totalorder %s2852_s30, 4   ;;  %s3502_s24 = smov %s2774_s25 }
 0x300   : > { %s3503_s25 = smov %s2778_s26  ;;  %s3504_s26 = smov %s2863_s10 }
 0x301   : > { %s3505_s27 = smov %s2852_s30  ;;  %19 = sbr.rel (!%p17_p2) target bundleno = 3 (0x3), region = 83 }
 0x306   :  { %1974 = vsyncpa [#allocation3], 1 }
 0x307   :  { %1976 = vsyncpa [#allocation3 + $0x1], 1 }

</bundles_post_ra>
